<compile_context>
chip_gen: v7x
topology: tpu7x:2x2x1
jax: 0.10.0
libtpu: 0.0.40
codegen_flags: <defaults>
</compile_context>

<pallas_src>
import functools

import jax
import jax.numpy as jnp
from jax import lax
from jax.experimental import pallas as pl
from jax.experimental.pallas import tpu as pltpu


# ----------------------------- config -------------------------------------
class Config:
    vocab_size = 64
    block_size = 16
    n_embd = 32
    n_head = 4
    n_layer = 2
    n_expert = 2
    ffn_mult = 4
    dropout = 0.0          # dropout disabled (deterministic / eval semantics)
    mask_token_id = 63


# --------------------------- Pallas kernel ----------------------------------
def _layer_norm(v, w, b, eps=1e-5):
    mu = jnp.mean(v, axis=-1, keepdims=True)
    var = jnp.mean((v - mu) ** 2, axis=-1, keepdims=True)
    return (v - mu) * lax.rsqrt(var + eps) * w + b


def _llada_kernel(x_ref,
                  ln1w_ref, ln1b_ref, wqkv_ref, bqkv_ref, wo_ref, bo_ref,
                  ln2w_ref, ln2b_ref, wup_ref, bup_ref, w2_ref, b2_ref,
                  lnfw_ref, lnfb_ref, wt_ref,
                  logits_ref, rloss_ref,
                  xs_ref,
                  *, B, T, n_head, n_expert, ffn_hidden):
    """One grid step == one LLaDA transformer block (last step also does the
    final LayerNorm + tied lm_head projection)."""
    l = pl.program_id(0)
    n_layer = pl.num_programs(0)
    N, C = xs_ref.shape
    Dh = C // n_head
    F = ffn_hidden
    scale = 1.0 / (Dh ** 0.5)

    @pl.when(l == 0)
    def _():
        xs_ref[...] = x_ref[...]            # activation becomes VMEM-resident
        rloss_ref[0] = jnp.float32(0.0)

    x = xs_ref[...]

    # ---------------- pre-LN bidirectional multi-head attention ---------------
    h = _layer_norm(x, ln1w_ref[...], ln1b_ref[...])
    # fused QKV: ONE (N, C) @ (C, 3C) MXU matmul (bf16 operands, f32 accum)
    qkv = jnp.dot(h.astype(jnp.bfloat16), wqkv_ref[...],
                  preferred_element_type=jnp.float32) + bqkv_ref[...]

    # Pack every (head, batch) pair into one leading batch axis so the whole
    # attention is TWO batched einsums (instead of per-head micro-matmuls).
    def _split(col0):
        parts = [qkv[:, col0 + hd * Dh: col0 + (hd + 1) * Dh].reshape(B, T, Dh)
                 for hd in range(n_head)]
        return jnp.concatenate(parts, axis=0).astype(jnp.bfloat16)   # (H*B,T,Dh)

    q = _split(0)
    k = _split(C)
    v = _split(2 * C)

    s = jnp.einsum('ztd,zsd->zts', q, k,
                   preferred_element_type=jnp.float32) * scale       # bidirectional
    s = s - jnp.max(s, axis=-1, keepdims=True)
    p = jnp.exp(s)
    p = p * pl.reciprocal(jnp.sum(p, axis=-1, keepdims=True), approx=True)
    o = jnp.einsum('zts,zsd->ztd', p.astype(jnp.bfloat16), v,
                   preferred_element_type=jnp.float32)               # (H*B,T,Dh)

    # re-interleave heads back to (N, C) = concat over heads
    attn = jnp.concatenate(
        [o[hd * B:(hd + 1) * B].reshape(N, Dh) for hd in range(n_head)], axis=-1)
    attn_out = jnp.dot(attn.astype(jnp.bfloat16), wo_ref[...],
                       preferred_element_type=jnp.float32) + bo_ref[...]
    x = x + attn_out

    # ---------------- pre-LN MoE FFN (experts + router fused) -----------------
    h2 = _layer_norm(x, ln2w_ref[...], ln2b_ref[...])
    # ONE fused up-projection: [w1_e0 | w1_e1 | router] -> (N, E*F + E)
    up = jnp.dot(h2.astype(jnp.bfloat16), wup_ref[...],
                 preferred_element_type=jnp.float32) + bup_ref[...]
    hid = jax.nn.gelu(up[:, :n_expert * F], approximate=True)         # (N, E*F)

    gate_logits = up[:, n_expert * F:]                                 # (N, E)
    gate_logits = gate_logits - jnp.max(gate_logits, axis=-1, keepdims=True)
    g = jnp.exp(gate_logits)
    gate = g / jnp.sum(g, axis=-1, keepdims=True)   # exact recip (2-way gate)

    # top-1 one-hot with deterministic (lowest-index) tie breaking
    e_iota = lax.broadcasted_iota(jnp.int32, gate.shape, 1)
    is_max = gate >= jnp.max(gate, axis=-1, keepdims=True)
    sel = jnp.min(jnp.where(is_max, e_iota, n_expert), axis=-1, keepdims=True)
    onehot = (e_iota == sel).astype(jnp.float32)
    wsel = gate * onehot                                               # (N, E)
    # TODO(synk): selected-expert gate weight is not renormalized to 1
    # (matches the original stand-in); adjust if the reference block differs.

    # scale each expert's lane-aligned hidden slab, then ONE stacked down-proj
    hid_scaled = jnp.concatenate(
        [(wsel[:, e:e + 1] * hid[:, e * F:(e + 1) * F]).astype(jnp.bfloat16)
         for e in range(n_expert)], axis=-1)                           # (N, E*F)
    moe = jnp.dot(hid_scaled, w2_ref[...],
                  preferred_element_type=jnp.float32)                  # (N, C)
    for e in range(n_expert):
        moe = moe + wsel[:, e:e + 1] * b2_ref[e]
    x = x + moe
    xs_ref[...] = x

    # Switch-style load-balancing router loss, accumulated across layers (SMEM)
    frac = jnp.mean(onehot, axis=0)
    prob = jnp.mean(gate, axis=0)
    rloss_ref[0] = rloss_ref[0] + jnp.float32(n_expert) * jnp.sum(frac * prob)

    # -------------- final LayerNorm + tied lm_head (last layer only) ----------
    @pl.when(l == n_layer - 1)
    def _():
        hf = _layer_norm(x, lnfw_ref[...], lnfb_ref[...])
        # lm_head weight pre-transposed to (C, Vp) with Vp = 128 (lane-dense out)
        logits_ref[...] = jnp.dot(hf.astype(jnp.bfloat16), wt_ref[...],
                                  preferred_element_type=jnp.float32
                                  ).astype(logits_ref.dtype)


def _wspec(shape):
    """Per-layer stacked weight: leading layer axis (squeezed), indexed by l."""
    nd = len(shape)
    return pl.BlockSpec((None,) + tuple(shape),
                        lambda l, _nd=nd: (l,) + (0,) * _nd)


def _cspec(shape):
    """Layer-independent array, resident across the grid."""
    nd = len(shape)
    return pl.BlockSpec(tuple(shape), lambda l, _nd=nd: (0,) * _nd)


def llada_stack_call(x2d, params, B, T, cfg):
    N, C = x2d.shape
    L, E = cfg.n_layer, cfg.n_expert
    F = cfg.ffn_mult * C
    Vp = params['lm_head_w'].shape[1]

    kern = functools.partial(_llada_kernel, B=B, T=T, n_head=cfg.n_head,
                             n_expert=E, ffn_hidden=F)

    args = (x2d,
            params['ln1_w'], params['ln1_b'], params['wqkv'], params['bqkv'],
            params['wo'], params['bo'], params['ln2_w'], params['ln2_b'],
            params['w_up'], params['b_up'], params['w2'], params['b2'],
            params['ln_f_w'], params['ln_f_b'], params['lm_head_w'])

    in_specs = [
        _cspec((N, C)),
        _wspec((1, C)), _wspec((1, C)), _wspec((C, 3 * C)), _wspec((1, 3 * C)),
        _wspec((C, C)), _wspec((1, C)), _wspec((1, C)), _wspec((1, C)),
        _wspec((C, E * F + E)), _wspec((1, E * F + E)),
        _wspec((E * F, C)), _wspec((E, C)),
        _cspec((1, C)), _cspec((1, C)), _cspec((C, Vp)),
    ]

    logits, rl = pl.pallas_call(
        kern,
        grid=(L,),
        out_shape=(jax.ShapeDtypeStruct((N, Vp), jnp.float32),
                   jax.ShapeDtypeStruct((1,), jnp.float32)),
        in_specs=in_specs,
        out_specs=(_cspec((N, Vp)),
                   pl.BlockSpec(memory_space=pltpu.MemorySpace.SMEM)),
        scratch_shapes=[pltpu.VMEM((N, C), jnp.float32)],
        compiler_params=pltpu.CompilerParams(
            dimension_semantics=("arbitrary",)),
    )(*args)
    return logits, rl[0]


# ------------------------------ model glue ----------------------------------
def init_params(key, cfg):
    C, V, E, L = cfg.n_embd, cfg.vocab_size, cfg.n_expert, cfg.n_layer
    F = cfg.ffn_mult * C
    Vp = ((V + 127) // 128) * 128
    keys = iter(jax.random.split(key, 8 + 8 * L))

    def nrm(shape):
        return 0.02 * jax.random.normal(next(keys), shape, jnp.float32)

    tok_emb = nrm((V, C))
    # tied lm_head: pre-transposed (C, V), zero-padded to (C, 128) lanes, bf16
    lm_head_w = jnp.zeros((C, Vp), jnp.float32).at[:, :V].set(tok_emb.T)

    wqkv_l, wo_l, wup_l, w2_l = [], [], [], []
    for _ in range(L):
        wq, wk, wv = nrm((C, C)), nrm((C, C)), nrm((C, C))
        wqkv_l.append(jnp.concatenate([wq, wk, wv], axis=1))          # (C, 3C)
        wo_l.append(nrm((C, C)))
        w1 = [nrm((C, F)) for _ in range(E)]
        wr = nrm((C, E))
        wup_l.append(jnp.concatenate(w1 + [wr], axis=1))              # (C, E*F+E)
        w2_l.append(jnp.concatenate([nrm((F, C)) for _ in range(E)], axis=0))

    params = {
        'tok_emb': tok_emb,                               # f32 for the gather
        'pos_emb': nrm((cfg.block_size, C)),
        'lm_head_w': lm_head_w.astype(jnp.bfloat16),      # (C, Vp)
        'ln_f_w': jnp.ones((1, C), jnp.float32),
        'ln_f_b': jnp.zeros((1, C), jnp.float32),
        # per-layer weights stacked with a leading layer axis
        'ln1_w': jnp.ones((L, 1, C), jnp.float32),
        'ln1_b': jnp.zeros((L, 1, C), jnp.float32),
        'wqkv': jnp.stack(wqkv_l).astype(jnp.bfloat16),   # (L, C, 3C)
        'bqkv': jnp.zeros((L, 1, 3 * C), jnp.float32),
        'wo': jnp.stack(wo_l).astype(jnp.bfloat16),       # (L, C, C)
        'bo': jnp.zeros((L, 1, C), jnp.float32),
        'ln2_w': jnp.ones((L, 1, C), jnp.float32),
        'ln2_b': jnp.zeros((L, 1, C), jnp.float32),
        'w_up': jnp.stack(wup_l).astype(jnp.bfloat16),    # (L, C, E*F+E)
        'b_up': jnp.zeros((L, 1, E * F + E), jnp.float32),
        'w2': jnp.stack(w2_l).astype(jnp.bfloat16),       # (L, E*F, C)
        'b2': jnp.zeros((L, E, C), jnp.float32),
    }
    return params


def forward_process(key, input_ids, cfg, eps=1e-3):
    """Diffusion forward (masking) process — mirrors LLaDAModel.forward_process."""
    B, T = input_ids.shape
    safe_mask_id = min(cfg.mask_token_id, cfg.vocab_size - 1)
    k1, k2 = jax.random.split(key)
    t = jax.random.uniform(k1, (B,), jnp.float32)
    p_mask = (1.0 - eps) * t + eps
    p_mask = jnp.repeat(p_mask[:, None], T, axis=1)
    masked = jax.random.uniform(k2, (B, T), jnp.float32) < p_mask
    noisy = jnp.where(masked, jnp.int32(safe_mask_id), input_ids)
    return noisy, masked, p_mask


def llada_forward(params, input_ids, cfg, targets=None, apply_masking=True,
                  eps=1e-3, rng=None):
    B, T = input_ids.shape
    assert T <= cfg.block_size

    if apply_masking:
        noisy, masked, p_mask = forward_process(rng, input_ids, cfg, eps)
    else:
        noisy, masked, p_mask = input_ids, None, None

    pos = jnp.arange(T)
    x = jnp.take(params['tok_emb'], noisy, axis=0)            # (B, T, C)
    x = x + jnp.take(params['pos_emb'], pos, axis=0)[None]    # + pos emb
    # dropout p = 0.0 -> identity

    x2d = x.reshape(B * T, cfg.n_embd)                        # flatten once

    # all layers + final LN + tied lm_head in ONE fused Pallas kernel
    logits_pad, total_router_loss = llada_stack_call(x2d, params, B, T, cfg)
    logits = logits_pad[:, :cfg.vocab_size].reshape(B, T, cfg.vocab_size)

    loss = None
    if targets is not None and masked is not None:
        logp = jax.nn.log_softmax(logits, axis=-1)
        tgt_logp = jnp.take_along_axis(logp, targets[..., None], axis=-1)[..., 0]
        token_loss = -tgt_logp / p_mask
        loss = jnp.sum(jnp.where(masked, token_loss, 0.0)) / (B * T)

    return logits, loss, total_router_loss


# --------------------------------- main --------------------------------------
if __name__ == "__main__":
    cfg = Config()
    key = jax.random.PRNGKey(0)
    k_param, k_ids, k_tgt, k_mask = jax.random.split(key, 4)

    params = init_params(k_param, cfg)

    B, T = 2, 8
    input_ids = jax.random.randint(k_ids, (B, T), 0, cfg.vocab_size, jnp.int32)
    targets = jax.random.randint(k_tgt, (B, T), 0, cfg.vocab_size, jnp.int32)

    logits, loss, router_loss = llada_forward(
        params, input_ids, cfg, targets=targets, apply_masking=True,
        eps=1e-3, rng=k_mask)

    logits = jax.block_until_ready(logits)
    loss = jax.block_until_ready(loss)
    router_loss = jax.block_until_ready(router_loss)

    assert logits.shape == (B, T, cfg.vocab_size)
    assert jnp.all(jnp.isfinite(logits))
    assert jnp.isfinite(loss)
    assert jnp.isfinite(router_loss)
    print("KERNEL_OK")
</pallas_src>

<mosaic_0001>
module attributes {stable_mosaic.version = 11 : i64} {
  func.func @_llada_kernel(%arg0: i32, %arg1: memref<16x32xf32, #tpu.memory_space<vmem>>, %arg2: memref<1x1x32xf32, #tpu.memory_space<vmem>>, %arg3: memref<1x1x32xf32, #tpu.memory_space<vmem>>, %arg4: memref<1x32x96xbf16, #tpu.memory_space<vmem>>, %arg5: memref<1x1x96xf32, #tpu.memory_space<vmem>>, %arg6: memref<1x32x32xbf16, #tpu.memory_space<vmem>>, %arg7: memref<1x1x32xf32, #tpu.memory_space<vmem>>, %arg8: memref<1x1x32xf32, #tpu.memory_space<vmem>>, %arg9: memref<1x1x32xf32, #tpu.memory_space<vmem>>, %arg10: memref<1x32x258xbf16, #tpu.memory_space<vmem>>, %arg11: memref<1x1x258xf32, #tpu.memory_space<vmem>>, %arg12: memref<1x256x32xbf16, #tpu.memory_space<vmem>>, %arg13: memref<1x2x32xf32, #tpu.memory_space<vmem>>, %arg14: memref<1x32xf32, #tpu.memory_space<vmem>>, %arg15: memref<1x32xf32, #tpu.memory_space<vmem>>, %arg16: memref<32x128xbf16, #tpu.memory_space<vmem>>, %arg17: memref<16x128xf32, #tpu.memory_space<vmem>>, %arg18: memref<1xf32, #tpu.memory_space<smem>>, %arg19: memref<16x32xf32, #tpu.memory_space<vmem>>) attributes {dimension_semantics = [#tpu.dimension_semantics<arbitrary>], iteration_bounds = array<i64: 2>, scalar_prefetch = 0 : i64, scratch_operands = 1 : i64, tpu.core_type = #tpu.core_type<tc>, window_params = [{pipeline_mode = #tpu.pipeline_mode<synchronous>, transform_indices = @transform_0, window_bounds = array<i64: 16, 32>}, {transform_indices = @transform_1, window_bounds = array<i64: 1, 1, 32>}, {transform_indices = @transform_2, window_bounds = array<i64: 1, 1, 32>}, {transform_indices = @transform_3, window_bounds = array<i64: 1, 32, 96>}, {transform_indices = @transform_4, window_bounds = array<i64: 1, 1, 96>}, {transform_indices = @transform_5, window_bounds = array<i64: 1, 32, 32>}, {transform_indices = @transform_6, window_bounds = array<i64: 1, 1, 32>}, {transform_indices = @transform_7, window_bounds = array<i64: 1, 1, 32>}, {transform_indices = @transform_8, window_bounds = array<i64: 1, 1, 32>}, {transform_indices = @transform_9, window_bounds = array<i64: 1, 32, 258>}, {transform_indices = @transform_10, window_bounds = array<i64: 1, 1, 258>}, {transform_indices = @transform_11, window_bounds = array<i64: 1, 256, 32>}, {transform_indices = @transform_12, window_bounds = array<i64: 1, 2, 32>}, {pipeline_mode = #tpu.pipeline_mode<synchronous>, transform_indices = @transform_13, window_bounds = array<i64: 1, 32>}, {pipeline_mode = #tpu.pipeline_mode<synchronous>, transform_indices = @transform_14, window_bounds = array<i64: 1, 32>}, {pipeline_mode = #tpu.pipeline_mode<synchronous>, transform_indices = @transform_15, window_bounds = array<i64: 32, 128>}, {pipeline_mode = #tpu.pipeline_mode<synchronous>, transform_indices = @transform_16, window_bounds = array<i64: 16, 128>}, {transform_indices = @transform_17, window_bounds = array<i64: 1>}]} {
    %c0_i32 = arith.constant 0 : i32
    %0 = arith.cmpi eq, %arg0, %c0_i32 : i32
    %1 = arith.extui %0 : i1 to i32
    %c0_i32_0 = arith.constant 0 : i32
    %2 = arith.cmpi ne, %1, %c0_i32_0 : i32
    scf.if %2 {
      %c0_77 = arith.constant 0 : index
      %c0_78 = arith.constant 0 : index
      %223 = vector.load %arg1[%c0_77, %c0_78] : memref<16x32xf32, #tpu.memory_space<vmem>>, vector<16x32xf32>
      %c0_79 = arith.constant 0 : index
      %c0_80 = arith.constant 0 : index
      %224 = vector.load %arg19[%c0_79, %c0_80] : memref<16x32xf32, #tpu.memory_space<vmem>>, vector<16x32xf32>
      tpu.vector_store %arg19[%c0_79, %c0_80], %223 {strides = array<i32>} : memref<16x32xf32, #tpu.memory_space<vmem>>, vector<16x32xf32>,
      %cst_81 = arith.constant 0.000000e+00 : f32
      %c0_82 = arith.constant 0 : index
      %225 = memref.load %arg18[%c0_82] : memref<1xf32, #tpu.memory_space<smem>>
      memref.store %cst_81, %arg18[%c0_82] : memref<1xf32, #tpu.memory_space<smem>>
    } else {
    }
    %c0 = arith.constant 0 : index
    %c0_1 = arith.constant 0 : index
    %3 = vector.load %arg19[%c0, %c0_1] : memref<16x32xf32, #tpu.memory_space<vmem>>, vector<16x32xf32>
    %c0_2 = arith.constant 0 : index
    %c0_3 = arith.constant 0 : index
    %c0_4 = arith.constant 0 : index
    %4 = vector.load %arg2[%c0_2, %c0_3, %c0_4] : memref<1x1x32xf32, #tpu.memory_space<vmem>>, vector<1x1x32xf32>
    %5 = vector.shape_cast %4 : vector<1x1x32xf32> to vector<1x32xf32>
    %c0_5 = arith.constant 0 : index
    %c0_6 = arith.constant 0 : index
    %c0_7 = arith.constant 0 : index
    %6 = vector.load %arg3[%c0_5, %c0_6, %c0_7] : memref<1x1x32xf32, #tpu.memory_space<vmem>>, vector<1x1x32xf32>
    %7 = vector.shape_cast %6 : vector<1x1x32xf32> to vector<1x32xf32>
    %cst = arith.constant dense<0.000000e+00> : vector<16xf32>
    %8 = vector.multi_reduction <add>, %3, %cst [1] : vector<16x32xf32> to vector<16xf32>
    %9 = vector.shape_cast %8 : vector<16xf32> to vector<16x1xf32>
    %cst_8 = arith.constant 3.200000e+01 : f32
    %10 = vector.broadcast %cst_8 : f32 to vector<16x1xf32>
    %11 = arith.divf %9, %10 : vector<16x1xf32>
    %12 = vector.broadcast %11 : vector<16x1xf32> to vector<16x32xf32>
    %13 = arith.subf %3, %12 : vector<16x32xf32>
    %14 = arith.mulf %13, %13 : vector<16x32xf32>
    %cst_9 = arith.constant dense<0.000000e+00> : vector<16xf32>
    %15 = vector.multi_reduction <add>, %14, %cst_9 [1] : vector<16x32xf32> to vector<16xf32>
    %16 = vector.shape_cast %15 : vector<16xf32> to vector<16x1xf32>
    %cst_10 = arith.constant 3.200000e+01 : f32
    %17 = vector.broadcast %cst_10 : f32 to vector<16x1xf32>
    %18 = arith.divf %16, %17 : vector<16x1xf32>
    %19 = vector.broadcast %11 : vector<16x1xf32> to vector<16x32xf32>
    %20 = arith.subf %3, %19 : vector<16x32xf32>
    %cst_11 = arith.constant 9.99999974E-6 : f32
    %21 = vector.broadcast %cst_11 : f32 to vector<16x1xf32>
    %22 = arith.addf %18, %21 : vector<16x1xf32>
    %23 = math.rsqrt %22 : vector<16x1xf32>
    %24 = vector.broadcast %23 : vector<16x1xf32> to vector<16x32xf32>
    %25 = arith.mulf %20, %24 : vector<16x32xf32>
    %26 = vector.broadcast %5 : vector<1x32xf32> to vector<16x32xf32>
    %27 = arith.mulf %25, %26 : vector<16x32xf32>
    %28 = vector.broadcast %7 : vector<1x32xf32> to vector<16x32xf32>
    %29 = arith.addf %27, %28 : vector<16x32xf32>
    %30 = arith.truncf %29 : vector<16x32xf32> to vector<16x32xbf16>
    %c0_12 = arith.constant 0 : index
    %c0_13 = arith.constant 0 : index
    %c0_14 = arith.constant 0 : index
    %31 = vector.load %arg4[%c0_12, %c0_13, %c0_14] : memref<1x32x96xbf16, #tpu.memory_space<vmem>>, vector<1x32x96xbf16>
    %32 = vector.shape_cast %31 : vector<1x32x96xbf16> to vector<32x96xbf16>
    %cst_15 = arith.constant dense<0.000000e+00> : vector<16x96xf32>
    %33 = tpu.matmul %30, %32, %cst_15 {dimension_numbers = #tpu.dot_dimension_numbers<[1], [0], [0], [1], [0, 0, 1, 1], [], []>} : vector<16x32xbf16>, vector<32x96xbf16>, vector<16x96xf32> -> vector<16x96xf32>
    %c0_16 = arith.constant 0 : index
    %c0_17 = arith.constant 0 : index
    %c0_18 = arith.constant 0 : index
    %34 = vector.load %arg5[%c0_16, %c0_17, %c0_18] : memref<1x1x96xf32, #tpu.memory_space<vmem>>, vector<1x1x96xf32>
    %35 = vector.shape_cast %34 : vector<1x1x96xf32> to vector<1x96xf32>
    %36 = vector.broadcast %35 : vector<1x96xf32> to vector<16x96xf32>
    %37 = arith.addf %33, %36 : vector<16x96xf32>
    %38 = vector.extract_strided_slice %37 {offsets = [0, 0], sizes = [16, 8], strides = [1, 1]} : vector<16x96xf32> to vector<16x8xf32>
    %39 = vector.shape_cast %38 : vector<16x8xf32> to vector<2x8x8xf32>
    %40 = vector.extract_strided_slice %37 {offsets = [0, 8], sizes = [16, 8], strides = [1, 1]} : vector<16x96xf32> to vector<16x8xf32>
    %41 = vector.shape_cast %40 : vector<16x8xf32> to vector<2x8x8xf32>
    %42 = vector.extract_strided_slice %37 {offsets = [0, 16], sizes = [16, 8], strides = [1, 1]} : vector<16x96xf32> to vector<16x8xf32>
    %43 = vector.shape_cast %42 : vector<16x8xf32> to vector<2x8x8xf32>
    %44 = vector.extract_strided_slice %37 {offsets = [0, 24], sizes = [16, 8], strides = [1, 1]} : vector<16x96xf32> to vector<16x8xf32>
    %45 = vector.shape_cast %44 : vector<16x8xf32> to vector<2x8x8xf32>
    %46 = tpu.concatenate %39, %41, %43, %45 in 0 : vector<2x8x8xf32>, vector<2x8x8xf32>, vector<2x8x8xf32>, vector<2x8x8xf32> -> vector<8x8x8xf32>
    %47 = arith.truncf %46 : vector<8x8x8xf32> to vector<8x8x8xbf16>
    %48 = vector.extract_strided_slice %37 {offsets = [0, 32], sizes = [16, 8], strides = [1, 1]} : vector<16x96xf32> to vector<16x8xf32>
    %49 = vector.shape_cast %48 : vector<16x8xf32> to vector<2x8x8xf32>
    %50 = vector.extract_strided_slice %37 {offsets = [0, 40], sizes = [16, 8], strides = [1, 1]} : vector<16x96xf32> to vector<16x8xf32>
    %51 = vector.shape_cast %50 : vector<16x8xf32> to vector<2x8x8xf32>
    %52 = vector.extract_strided_slice %37 {offsets = [0, 48], sizes = [16, 8], strides = [1, 1]} : vector<16x96xf32> to vector<16x8xf32>
    %53 = vector.shape_cast %52 : vector<16x8xf32> to vector<2x8x8xf32>
    %54 = vector.extract_strided_slice %37 {offsets = [0, 56], sizes = [16, 8], strides = [1, 1]} : vector<16x96xf32> to vector<16x8xf32>
    %55 = vector.shape_cast %54 : vector<16x8xf32> to vector<2x8x8xf32>
    %56 = tpu.concatenate %49, %51, %53, %55 in 0 : vector<2x8x8xf32>, vector<2x8x8xf32>, vector<2x8x8xf32>, vector<2x8x8xf32> -> vector<8x8x8xf32>
    %57 = arith.truncf %56 : vector<8x8x8xf32> to vector<8x8x8xbf16>
    %58 = vector.extract_strided_slice %37 {offsets = [0, 64], sizes = [16, 8], strides = [1, 1]} : vector<16x96xf32> to vector<16x8xf32>
    %59 = vector.shape_cast %58 : vector<16x8xf32> to vector<2x8x8xf32>
    %60 = vector.extract_strided_slice %37 {offsets = [0, 72], sizes = [16, 8], strides = [1, 1]} : vector<16x96xf32> to vector<16x8xf32>
    %61 = vector.shape_cast %60 : vector<16x8xf32> to vector<2x8x8xf32>
    %62 = vector.extract_strided_slice %37 {offsets = [0, 80], sizes = [16, 8], strides = [1, 1]} : vector<16x96xf32> to vector<16x8xf32>
    %63 = vector.shape_cast %62 : vector<16x8xf32> to vector<2x8x8xf32>
    %64 = vector.extract_strided_slice %37 {offsets = [0, 88], sizes = [16, 8], strides = [1, 1]} : vector<16x96xf32> to vector<16x8xf32>
    %65 = vector.shape_cast %64 : vector<16x8xf32> to vector<2x8x8xf32>
    %66 = tpu.concatenate %59, %61, %63, %65 in 0 : vector<2x8x8xf32>, vector<2x8x8xf32>, vector<2x8x8xf32>, vector<2x8x8xf32> -> vector<8x8x8xf32>
    %67 = arith.truncf %66 : vector<8x8x8xf32> to vector<8x8x8xbf16>
    "tpu.trace_start"() <{level = 10 : i32, message = "ztd,zsd->zts"}> : () -> ()
    %cst_19 = arith.constant dense<0.000000e+00> : vector<8x8x8xf32>
    %68 = tpu.matmul %47, %57, %cst_19 {dimension_numbers = #tpu.dot_dimension_numbers<[2], [2], [1], [1], [0, 0, 0, 1, 1, 1], [0], [0]>} : vector<8x8x8xbf16>, vector<8x8x8xbf16>, vector<8x8x8xf32> -> vector<8x8x8xf32>
    "tpu.trace_stop"() : () -> ()
    %cst_20 = arith.constant 0.353553385 : f32
    %69 = vector.broadcast %cst_20 : f32 to vector<8x8x8xf32>
    %70 = arith.mulf %68, %69 : vector<8x8x8xf32>
    %cst_21 = arith.constant dense<0xFF800000> : vector<8x8xf32>
    %71 = vector.multi_reduction <maximumf>, %70, %cst_21 [2] : vector<8x8x8xf32> to vector<8x8xf32>
    %72 = vector.shape_cast %71 : vector<8x8xf32> to vector<8x8x1xf32>
    %73 = vector.broadcast %72 : vector<8x8x1xf32> to vector<8x8x8xf32>
    %74 = arith.subf %70, %73 : vector<8x8x8xf32>
    %75 = math.exp %74 : vector<8x8x8xf32>
    %cst_22 = arith.constant dense<0.000000e+00> : vector<8x8xf32>
    %76 = vector.multi_reduction <add>, %75, %cst_22 [2] : vector<8x8x8xf32> to vector<8x8xf32>
    %77 = vector.shape_cast %76 : vector<8x8xf32> to vector<8x8x1xf32>
    %78 = tpu.reciprocal %77 {approx = true} : vector<8x8x1xf32> -> vector<8x8x1xf32>
    %79 = vector.broadcast %78 : vector<8x8x1xf32> to vector<8x8x8xf32>
    %80 = arith.mulf %75, %79 : vector<8x8x8xf32>
    %81 = arith.truncf %80 : vector<8x8x8xf32> to vector<8x8x8xbf16>
    "tpu.trace_start"() <{level = 10 : i32, message = "zts,zsd->ztd"}> : () -> ()
    %cst_23 = arith.constant dense<0.000000e+00> : vector<8x8x8xf32>
    %82 = tpu.matmul %81, %67, %cst_23 {dimension_numbers = #tpu.dot_dimension_numbers<[2], [1], [1], [2], [0, 0, 0, 1, 1, 2], [0], [0]>} : vector<8x8x8xbf16>, vector<8x8x8xbf16>, vector<8x8x8xf32> -> vector<8x8x8xf32>
    "tpu.trace_stop"() : () -> ()
    %83 = vector.extract_strided_slice %82 {offsets = [0, 0, 0], sizes = [2, 8, 8], strides = [1, 1, 1]} : vector<8x8x8xf32> to vector<2x8x8xf32>
    %84 = vector.shape_cast %83 : vector<2x8x8xf32> to vector<16x8xf32>
    %85 = vector.extract_strided_slice %82 {offsets = [2, 0, 0], sizes = [2, 8, 8], strides = [1, 1, 1]} : vector<8x8x8xf32> to vector<2x8x8xf32>
    %86 = vector.shape_cast %85 : vector<2x8x8xf32> to vector<16x8xf32>
    %87 = vector.extract_strided_slice %82 {offsets = [4, 0, 0], sizes = [2, 8, 8], strides = [1, 1, 1]} : vector<8x8x8xf32> to vector<2x8x8xf32>
    %88 = vector.shape_cast %87 : vector<2x8x8xf32> to vector<16x8xf32>
    %89 = vector.extract_strided_slice %82 {offsets = [6, 0, 0], sizes = [2, 8, 8], strides = [1, 1, 1]} : vector<8x8x8xf32> to vector<2x8x8xf32>
    %90 = vector.shape_cast %89 : vector<2x8x8xf32> to vector<16x8xf32>
    %91 = tpu.concatenate %84, %86, %88, %90 in 1 : vector<16x8xf32>, vector<16x8xf32>, vector<16x8xf32>, vector<16x8xf32> -> vector<16x32xf32>
    %92 = arith.truncf %91 : vector<16x32xf32> to vector<16x32xbf16>
    %c0_24 = arith.constant 0 : index
    %c0_25 = arith.constant 0 : index
    %c0_26 = arith.constant 0 : index
    %93 = vector.load %arg6[%c0_24, %c0_25, %c0_26] : memref<1x32x32xbf16, #tpu.memory_space<vmem>>, vector<1x32x32xbf16>
    %94 = vector.shape_cast %93 : vector<1x32x32xbf16> to vector<32x32xbf16>
    %cst_27 = arith.constant dense<0.000000e+00> : vector<16x32xf32>
    %95 = tpu.matmul %92, %94, %cst_27 {dimension_numbers = #tpu.dot_dimension_numbers<[1], [0], [0], [1], [0, 0, 1, 1], [], []>} : vector<16x32xbf16>, vector<32x32xbf16>, vector<16x32xf32> -> vector<16x32xf32>
    %c0_28 = arith.constant 0 : index
    %c0_29 = arith.constant 0 : index
    %c0_30 = arith.constant 0 : index
    %96 = vector.load %arg7[%c0_28, %c0_29, %c0_30] : memref<1x1x32xf32, #tpu.memory_space<vmem>>, vector<1x1x32xf32>
    %97 = vector.shape_cast %96 : vector<1x1x32xf32> to vector<1x32xf32>
    %98 = vector.broadcast %97 : vector<1x32xf32> to vector<16x32xf32>
    %99 = arith.addf %95, %98 : vector<16x32xf32>
    %100 = arith.addf %3, %99 : vector<16x32xf32>
    %c0_31 = arith.constant 0 : index
    %c0_32 = arith.constant 0 : index
    %c0_33 = arith.constant 0 : index
    %101 = vector.load %arg8[%c0_31, %c0_32, %c0_33] : memref<1x1x32xf32, #tpu.memory_space<vmem>>, vector<1x1x32xf32>
    %102 = vector.shape_cast %101 : vector<1x1x32xf32> to vector<1x32xf32>
    %c0_34 = arith.constant 0 : index
    %c0_35 = arith.constant 0 : index
    %c0_36 = arith.constant 0 : index
    %103 = vector.load %arg9[%c0_34, %c0_35, %c0_36] : memref<1x1x32xf32, #tpu.memory_space<vmem>>, vector<1x1x32xf32>
    %104 = vector.shape_cast %103 : vector<1x1x32xf32> to vector<1x32xf32>
    %cst_37 = arith.constant dense<0.000000e+00> : vector<16xf32>
    %105 = vector.multi_reduction <add>, %100, %cst_37 [1] : vector<16x32xf32> to vector<16xf32>
    %106 = vector.shape_cast %105 : vector<16xf32> to vector<16x1xf32>
    %cst_38 = arith.constant 3.200000e+01 : f32
    %107 = vector.broadcast %cst_38 : f32 to vector<16x1xf32>
    %108 = arith.divf %106, %107 : vector<16x1xf32>
    %109 = vector.broadcast %108 : vector<16x1xf32> to vector<16x32xf32>
    %110 = arith.subf %100, %109 : vector<16x32xf32>
    %111 = arith.mulf %110, %110 : vector<16x32xf32>
    %cst_39 = arith.constant dense<0.000000e+00> : vector<16xf32>
    %112 = vector.multi_reduction <add>, %111, %cst_39 [1] : vector<16x32xf32> to vector<16xf32>
    %113 = vector.shape_cast %112 : vector<16xf32> to vector<16x1xf32>
    %cst_40 = arith.constant 3.200000e+01 : f32
    %114 = vector.broadcast %cst_40 : f32 to vector<16x1xf32>
    %115 = arith.divf %113, %114 : vector<16x1xf32>
    %116 = vector.broadcast %108 : vector<16x1xf32> to vector<16x32xf32>
    %117 = arith.subf %100, %116 : vector<16x32xf32>
    %cst_41 = arith.constant 9.99999974E-6 : f32
    %118 = vector.broadcast %cst_41 : f32 to vector<16x1xf32>
    %119 = arith.addf %115, %118 : vector<16x1xf32>
    %120 = math.rsqrt %119 : vector<16x1xf32>
    %121 = vector.broadcast %120 : vector<16x1xf32> to vector<16x32xf32>
    %122 = arith.mulf %117, %121 : vector<16x32xf32>
    %123 = vector.broadcast %102 : vector<1x32xf32> to vector<16x32xf32>
    %124 = arith.mulf %122, %123 : vector<16x32xf32>
    %125 = vector.broadcast %104 : vector<1x32xf32> to vector<16x32xf32>
    %126 = arith.addf %124, %125 : vector<16x32xf32>
    %127 = arith.truncf %126 : vector<16x32xf32> to vector<16x32xbf16>
    %c0_42 = arith.constant 0 : index
    %c0_43 = arith.constant 0 : index
    %c0_44 = arith.constant 0 : index
    %128 = vector.load %arg10[%c0_42, %c0_43, %c0_44] : memref<1x32x258xbf16, #tpu.memory_space<vmem>>, vector<1x32x258xbf16>
    %129 = vector.shape_cast %128 : vector<1x32x258xbf16> to vector<32x258xbf16>
    %cst_45 = arith.constant dense<0.000000e+00> : vector<16x258xf32>
    %130 = tpu.matmul %127, %129, %cst_45 {dimension_numbers = #tpu.dot_dimension_numbers<[1], [0], [0], [1], [0, 0, 1, 1], [], []>} : vector<16x32xbf16>, vector<32x258xbf16>, vector<16x258xf32> -> vector<16x258xf32>
    %c0_46 = arith.constant 0 : index
    %c0_47 = arith.constant 0 : index
    %c0_48 = arith.constant 0 : index
    %131 = vector.load %arg11[%c0_46, %c0_47, %c0_48] : memref<1x1x258xf32, #tpu.memory_space<vmem>>, vector<1x1x258xf32>
    %132 = vector.shape_cast %131 : vector<1x1x258xf32> to vector<1x258xf32>
    %133 = vector.broadcast %132 : vector<1x258xf32> to vector<16x258xf32>
    %134 = arith.addf %130, %133 : vector<16x258xf32>
    %135 = vector.extract_strided_slice %134 {offsets = [0, 0], sizes = [16, 256], strides = [1, 1]} : vector<16x258xf32> to vector<16x256xf32>
    %136 = arith.mulf %135, %135 : vector<16x256xf32>
    %137 = arith.mulf %135, %136 : vector<16x256xf32>
    %cst_49 = arith.constant 4.471500e-02 : f32
    %138 = vector.broadcast %cst_49 : f32 to vector<16x256xf32>
    %139 = arith.mulf %138, %137 : vector<16x256xf32>
    %140 = arith.addf %135, %139 : vector<16x256xf32>
    %cst_50 = arith.constant 0.797884583 : f32
    %141 = vector.broadcast %cst_50 : f32 to vector<16x256xf32>
    %142 = arith.mulf %141, %140 : vector<16x256xf32>
    %143 = math.tanh %142 : vector<16x256xf32>
    %cst_51 = arith.constant 1.000000e+00 : f32
    %144 = vector.broadcast %cst_51 : f32 to vector<16x256xf32>
    %145 = arith.addf %144, %143 : vector<16x256xf32>
    %cst_52 = arith.constant 5.000000e-01 : f32
    %146 = vector.broadcast %cst_52 : f32 to vector<16x256xf32>
    %147 = arith.mulf %146, %145 : vector<16x256xf32>
    %148 = arith.mulf %135, %147 : vector<16x256xf32>
    %149 = vector.extract_strided_slice %134 {offsets = [0, 256], sizes = [16, 2], strides = [1, 1]} : vector<16x258xf32> to vector<16x2xf32>
    %cst_53 = arith.constant dense<0xFF800000> : vector<16xf32>
    %150 = vector.multi_reduction <maximumf>, %149, %cst_53 [1] : vector<16x2xf32> to vector<16xf32>
    %151 = vector.shape_cast %150 : vector<16xf32> to vector<16x1xf32>
    %152 = vector.broadcast %151 : vector<16x1xf32> to vector<16x2xf32>
    %153 = arith.subf %149, %152 : vector<16x2xf32>
    %154 = math.exp %153 : vector<16x2xf32>
    %cst_54 = arith.constant dense<0.000000e+00> : vector<16xf32>
    %155 = vector.multi_reduction <add>, %154, %cst_54 [1] : vector<16x2xf32> to vector<16xf32>
    %156 = vector.shape_cast %155 : vector<16xf32> to vector<16x1xf32>
    %157 = vector.broadcast %156 : vector<16x1xf32> to vector<16x2xf32>
    %158 = arith.divf %154, %157 : vector<16x2xf32>
    %159 = tpu.iota {dimensions = array<i32: 1>} : vector<16x2xi32>
    %cst_55 = arith.constant dense<0xFF800000> : vector<16xf32>
    %160 = vector.multi_reduction <maximumf>, %158, %cst_55 [1] : vector<16x2xf32> to vector<16xf32>
    %161 = vector.shape_cast %160 : vector<16xf32> to vector<16x1xf32>
    %162 = vector.broadcast %161 : vector<16x1xf32> to vector<16x2xf32>
    %163 = arith.cmpf oge, %158, %162 : vector<16x2xf32>
    %c2_i32 = arith.constant 2 : i32
    %164 = vector.broadcast %c2_i32 : i32 to vector<16x2xi32>
    %165 = arith.select %163, %159, %164 : vector<16x2xi1>, vector<16x2xi32>
    %cst_56 = arith.constant dense<2147483647> : vector<16xi32>
    %166 = vector.multi_reduction <minsi>, %165, %cst_56 [1] : vector<16x2xi32> to vector<16xi32>
    %167 = vector.shape_cast %166 : vector<16xi32> to vector<16x1xi32>
    %168 = vector.broadcast %167 : vector<16x1xi32> to vector<16x2xi32>
    %169 = arith.cmpi eq, %159, %168 : vector<16x2xi32>
    %170 = arith.extui %169 : vector<16x2xi1> to vector<16x2xi32>
    %171 = arith.sitofp %170 : vector<16x2xi32> to vector<16x2xf32>
    %172 = arith.mulf %158, %171 : vector<16x2xf32>
    %173 = vector.extract_strided_slice %172 {offsets = [0, 0], sizes = [16, 1], strides = [1, 1]} : vector<16x2xf32> to vector<16x1xf32>
    %174 = vector.extract_strided_slice %148 {offsets = [0, 0], sizes = [16, 128], strides = [1, 1]} : vector<16x256xf32> to vector<16x128xf32>
    %175 = vector.broadcast %173 : vector<16x1xf32> to vector<16x128xf32>
    %176 = arith.mulf %175, %174 : vector<16x128xf32>
    %177 = arith.truncf %176 : vector<16x128xf32> to vector<16x128xbf16>
    %178 = vector.extract_strided_slice %172 {offsets = [0, 1], sizes = [16, 1], strides = [1, 1]} : vector<16x2xf32> to vector<16x1xf32>
    %179 = vector.extract_strided_slice %148 {offsets = [0, 128], sizes = [16, 128], strides = [1, 1]} : vector<16x256xf32> to vector<16x128xf32>
    %180 = vector.broadcast %178 : vector<16x1xf32> to vector<16x128xf32>
    %181 = arith.mulf %180, %179 : vector<16x128xf32>
    %182 = arith.truncf %181 : vector<16x128xf32> to vector<16x128xbf16>
    %183 = tpu.concatenate %177, %182 in 1 : vector<16x128xbf16>, vector<16x128xbf16> -> vector<16x256xbf16>
    %c0_57 = arith.constant 0 : index
    %c0_58 = arith.constant 0 : index
    %c0_59 = arith.constant 0 : index
    %184 = vector.load %arg12[%c0_57, %c0_58, %c0_59] : memref<1x256x32xbf16, #tpu.memory_space<vmem>>, vector<1x256x32xbf16>
    %185 = vector.shape_cast %184 : vector<1x256x32xbf16> to vector<256x32xbf16>
    %cst_60 = arith.constant dense<0.000000e+00> : vector<16x32xf32>
    %186 = tpu.matmul %183, %185, %cst_60 {dimension_numbers = #tpu.dot_dimension_numbers<[1], [0], [0], [1], [0, 0, 1, 1], [], []>} : vector<16x256xbf16>, vector<256x32xbf16>, vector<16x32xf32> -> vector<16x32xf32>
    %187 = vector.extract_strided_slice %172 {offsets = [0, 0], sizes = [16, 1], strides = [1, 1]} : vector<16x2xf32> to vector<16x1xf32>
    %c0_61 = arith.constant 0 : index
    %c0_62 = arith.constant 0 : index
    %c0_63 = arith.constant 0 : index
    %188 = vector.load %arg13[%c0_61, %c0_62, %c0_63] : memref<1x2x32xf32, #tpu.memory_space<vmem>>, vector<1x1x32xf32>
    %189 = vector.shape_cast %188 : vector<1x1x32xf32> to vector<32xf32>
    %190 = vector.shape_cast %189 : vector<32xf32> to vector<1x32xf32>
    %191 = vector.broadcast %187 : vector<16x1xf32> to vector<16x32xf32>
    %192 = vector.broadcast %190 : vector<1x32xf32> to vector<16x32xf32>
    %193 = arith.mulf %191, %192 : vector<16x32xf32>
    %194 = arith.addf %186, %193 : vector<16x32xf32>
    %195 = vector.extract_strided_slice %172 {offsets = [0, 1], sizes = [16, 1], strides = [1, 1]} : vector<16x2xf32> to vector<16x1xf32>
    %c0_64 = arith.constant 0 : index
    %c1 = arith.constant 1 : index
    %c0_65 = arith.constant 0 : index
    %196 = vector.load %arg13[%c0_64, %c1, %c0_65] : memref<1x2x32xf32, #tpu.memory_space<vmem>>, vector<1x1x32xf32>
    %197 = vector.shape_cast %196 : vector<1x1x32xf32> to vector<32xf32>
    %198 = vector.shape_cast %197 : vector<32xf32> to vector<1x32xf32>
    %199 = vector.broadcast %195 : vector<16x1xf32> to vector<16x32xf32>
    %200 = vector.broadcast %198 : vector<1x32xf32> to vector<16x32xf32>
    %201 = arith.mulf %199, %200 : vector<16x32xf32>
    %202 = arith.addf %194, %201 : vector<16x32xf32>
    %203 = arith.addf %100, %202 : vector<16x32xf32>
    %c0_66 = arith.constant 0 : index
    %c0_67 = arith.constant 0 : index
    %204 = vector.load %arg19[%c0_66, %c0_67] : memref<16x32xf32, #tpu.memory_space<vmem>>, vector<16x32xf32>
    tpu.vector_store %arg19[%c0_66, %c0_67], %203 {strides = array<i32>} : memref<16x32xf32, #tpu.memory_space<vmem>>, vector<16x32xf32>,
    %cst_68 = arith.constant dense<0.000000e+00> : vector<2xf32>
    %205 = vector.multi_reduction <add>, %171, %cst_68 [0] : vector<16x2xf32> to vector<2xf32>
    %cst_69 = arith.constant 1.600000e+01 : f32
    %206 = vector.broadcast %cst_69 : f32 to vector<2xf32>
    %207 = arith.divf %205, %206 : vector<2xf32>
    %cst_70 = arith.constant dense<0.000000e+00> : vector<2xf32>
    %208 = vector.multi_reduction <add>, %158, %cst_70 [0] : vector<16x2xf32> to vector<2xf32>
    %cst_71 = arith.constant 1.600000e+01 : f32
    %209 = vector.broadcast %cst_71 : f32 to vector<2xf32>
    %210 = arith.divf %208, %209 : vector<2xf32>
    %c0_72 = arith.constant 0 : index
    %211 = memref.load %arg18[%c0_72] : memref<1xf32, #tpu.memory_space<smem>>
    %212 = arith.mulf %207, %210 : vector<2xf32>
    %213 = vector.shape_cast %212 : vector<2xf32> to vector<1x2xf32>
    %cst_73 = arith.constant dense<0.000000e+00> : vector<1xf32>
    %214 = vector.multi_reduction <add>, %213, %cst_73 [1] : vector<1x2xf32> to vector<1xf32>
    %215 = vector.shape_cast %214 : vector<1xf32> to vector<1x1xf32>
    %216 = vector.extract %215[0, 0] : f32 from vector<1x1xf32>
    %cst_74 = arith.constant 2.000000e+00 : f32
    %217 = arith.mulf %cst_74, %216 : f32
    %218 = arith.addf %211, %217 : f32
    %c0_75 = arith.constant 0 : index
    %219 = memref.load %arg18[%c0_75] : memref<1xf32, #tpu.memory_space<smem>>
    memref.store %218, %arg18[%c0_75] : memref<1xf32, #tpu.memory_space<smem>>
    %c1_i32 = arith.constant 1 : i32
    %220 = arith.cmpi eq, %arg0, %c1_i32 : i32
    %221 = arith.extui %220 : i1 to i32
    %c0_i32_76 = arith.constant 0 : i32
    %222 = arith.cmpi ne, %221, %c0_i32_76 : i32
    scf.if %222 {
      %c0_77 = arith.constant 0 : index
      %c0_78 = arith.constant 0 : index
      %223 = vector.load %arg14[%c0_77, %c0_78] : memref<1x32xf32, #tpu.memory_space<vmem>>, vector<1x32xf32>
      %c0_79 = arith.constant 0 : index
      %c0_80 = arith.constant 0 : index
      %224 = vector.load %arg15[%c0_79, %c0_80] : memref<1x32xf32, #tpu.memory_space<vmem>>, vector<1x32xf32>
      %cst_81 = arith.constant dense<0.000000e+00> : vector<16xf32>
      %225 = vector.multi_reduction <add>, %203, %cst_81 [1] : vector<16x32xf32> to vector<16xf32>
      %226 = vector.shape_cast %225 : vector<16xf32> to vector<16x1xf32>
      %cst_82 = arith.constant 3.200000e+01 : f32
      %227 = vector.broadcast %cst_82 : f32 to vector<16x1xf32>
      %228 = arith.divf %226, %227 : vector<16x1xf32>
      %229 = vector.broadcast %228 : vector<16x1xf32> to vector<16x32xf32>
      %230 = arith.subf %203, %229 : vector<16x32xf32>
      %231 = arith.mulf %230, %230 : vector<16x32xf32>
      %cst_83 = arith.constant dense<0.000000e+00> : vector<16xf32>
      %232 = vector.multi_reduction <add>, %231, %cst_83 [1] : vector<16x32xf32> to vector<16xf32>
      %233 = vector.shape_cast %232 : vector<16xf32> to vector<16x1xf32>
      %cst_84 = arith.constant 3.200000e+01 : f32
      %234 = vector.broadcast %cst_84 : f32 to vector<16x1xf32>
      %235 = arith.divf %233, %234 : vector<16x1xf32>
      %236 = vector.broadcast %228 : vector<16x1xf32> to vector<16x32xf32>
      %237 = arith.subf %203, %236 : vector<16x32xf32>
      %cst_85 = arith.constant 9.99999974E-6 : f32
      %238 = vector.broadcast %cst_85 : f32 to vector<16x1xf32>
      %239 = arith.addf %235, %238 : vector<16x1xf32>
      %240 = math.rsqrt %239 : vector<16x1xf32>
      %241 = vector.broadcast %240 : vector<16x1xf32> to vector<16x32xf32>
      %242 = arith.mulf %237, %241 : vector<16x32xf32>
      %243 = vector.broadcast %223 : vector<1x32xf32> to vector<16x32xf32>
      %244 = arith.mulf %242, %243 : vector<16x32xf32>
      %245 = vector.broadcast %224 : vector<1x32xf32> to vector<16x32xf32>
      %246 = arith.addf %244, %245 : vector<16x32xf32>
      %247 = arith.truncf %246 : vector<16x32xf32> to vector<16x32xbf16>
      %c0_86 = arith.constant 0 : index
      %c0_87 = arith.constant 0 : index
      %248 = vector.load %arg16[%c0_86, %c0_87] : memref<32x128xbf16, #tpu.memory_space<vmem>>, vector<32x128xbf16>
      %cst_88 = arith.constant dense<0.000000e+00> : vector<16x128xf32>
      %249 = tpu.matmul %247, %248, %cst_88 {dimension_numbers = #tpu.dot_dimension_numbers<[1], [0], [0], [1], [0, 0, 1, 1], [], []>} : vector<16x32xbf16>, vector<32x128xbf16>, vector<16x128xf32> -> vector<16x128xf32>
      %c0_89 = arith.constant 0 : index
      %c0_90 = arith.constant 0 : index
      %250 = vector.load %arg17[%c0_89, %c0_90] : memref<16x128xf32, #tpu.memory_space<vmem>>, vector<16x128xf32>
      tpu.vector_store %arg17[%c0_89, %c0_90], %249 {strides = array<i32>} : memref<16x128xf32, #tpu.memory_space<vmem>>, vector<16x128xf32>,
    } else {
    }
    return
  }
  func.func @transform_0(%arg0: i32) -> (i32, i32) {
    %c0_i32 = arith.constant 0 : i32
    %c0_i32_0 = arith.constant 0 : i32
    %c0_i32_1 = arith.constant 0 : i32
    return %c0_i32, %c0_i32_0 : i32, i32
  }
  func.func @transform_1(%arg0: i32) -> (i32, i32, i32) {
    %c0_i32 = arith.constant 0 : i32
    %c0_i32_0 = arith.constant 0 : i32
    %c0_i32_1 = arith.constant 0 : i32
    return %arg0, %c0_i32, %c0_i32_0 : i32, i32, i32
  }
  func.func @transform_2(%arg0: i32) -> (i32, i32, i32) {
    %c0_i32 = arith.constant 0 : i32
    %c0_i32_0 = arith.constant 0 : i32
    %c0_i32_1 = arith.constant 0 : i32
    return %arg0, %c0_i32, %c0_i32_0 : i32, i32, i32
  }
  func.func @transform_3(%arg0: i32) -> (i32, i32, i32) {
    %c0_i32 = arith.constant 0 : i32
    %c0_i32_0 = arith.constant 0 : i32
    %c0_i32_1 = arith.constant 0 : i32
    return %arg0, %c0_i32, %c0_i32_0 : i32, i32, i32
  }
  func.func @transform_4(%arg0: i32) -> (i32, i32, i32) {
    %c0_i32 = arith.constant 0 : i32
    %c0_i32_0 = arith.constant 0 : i32
    %c0_i32_1 = arith.constant 0 : i32
    return %arg0, %c0_i32, %c0_i32_0 : i32, i32, i32
  }
  func.func @transform_5(%arg0: i32) -> (i32, i32, i32) {
    %c0_i32 = arith.constant 0 : i32
    %c0_i32_0 = arith.constant 0 : i32
    %c0_i32_1 = arith.constant 0 : i32
    return %arg0, %c0_i32, %c0_i32_0 : i32, i32, i32
  }
  func.func @transform_6(%arg0: i32) -> (i32, i32, i32) {
    %c0_i32 = arith.constant 0 : i32
    %c0_i32_0 = arith.constant 0 : i32
    %c0_i32_1 = arith.constant 0 : i32
    return %arg0, %c0_i32, %c0_i32_0 : i32, i32, i32
  }
  func.func @transform_7(%arg0: i32) -> (i32, i32, i32) {
    %c0_i32 = arith.constant 0 : i32
    %c0_i32_0 = arith.constant 0 : i32
    %c0_i32_1 = arith.constant 0 : i32
    return %arg0, %c0_i32, %c0_i32_0 : i32, i32, i32
  }
  func.func @transform_8(%arg0: i32) -> (i32, i32, i32) {
    %c0_i32 = arith.constant 0 : i32
    %c0_i32_0 = arith.constant 0 : i32
    %c0_i32_1 = arith.constant 0 : i32
    return %arg0, %c0_i32, %c0_i32_0 : i32, i32, i32
  }
  func.func @transform_9(%arg0: i32) -> (i32, i32, i32) {
    %c0_i32 = arith.constant 0 : i32
    %c0_i32_0 = arith.constant 0 : i32
    %c0_i32_1 = arith.constant 0 : i32
    return %arg0, %c0_i32, %c0_i32_0 : i32, i32, i32
  }
  func.func @transform_10(%arg0: i32) -> (i32, i32, i32) {
    %c0_i32 = arith.constant 0 : i32
    %c0_i32_0 = arith.constant 0 : i32
    %c0_i32_1 = arith.constant 0 : i32
    return %arg0, %c0_i32, %c0_i32_0 : i32, i32, i32
  }
  func.func @transform_11(%arg0: i32) -> (i32, i32, i32) {
    %c0_i32 = arith.constant 0 : i32
    %c0_i32_0 = arith.constant 0 : i32
    %c0_i32_1 = arith.constant 0 : i32
    return %arg0, %c0_i32, %c0_i32_0 : i32, i32, i32
  }
  func.func @transform_12(%arg0: i32) -> (i32, i32, i32) {
    %c0_i32 = arith.constant 0 : i32
    %c0_i32_0 = arith.constant 0 : i32
    %c0_i32_1 = arith.constant 0 : i32
    return %arg0, %c0_i32, %c0_i32_0 : i32, i32, i32
  }
  func.func @transform_13(%arg0: i32) -> (i32, i32) {
    %c0_i32 = arith.constant 0 : i32
    %c0_i32_0 = arith.constant 0 : i32
    %c0_i32_1 = arith.constant 0 : i32
    return %c0_i32, %c0_i32_0 : i32, i32
  }
  func.func @transform_14(%arg0: i32) -> (i32, i32) {
    %c0_i32 = arith.constant 0 : i32
    %c0_i32_0 = arith.constant 0 : i32
    %c0_i32_1 = arith.constant 0 : i32
    return %c0_i32, %c0_i32_0 : i32, i32
  }
  func.func @transform_15(%arg0: i32) -> (i32, i32) {
    %c0_i32 = arith.constant 0 : i32
    %c0_i32_0 = arith.constant 0 : i32
    %c0_i32_1 = arith.constant 0 : i32
    return %c0_i32, %c0_i32_0 : i32, i32
  }
  func.func @transform_16(%arg0: i32) -> (i32, i32) {
    %c0_i32 = arith.constant 0 : i32
    %c0_i32_0 = arith.constant 0 : i32
    %c0_i32_1 = arith.constant 0 : i32
    return %c0_i32, %c0_i32_0 : i32, i32
  }
  func.func @transform_17(%arg0: i32) -> i32 {
    %c0_i32 = arith.constant 0 : i32
    %c0_i32_0 = arith.constant 0 : i32
    return %c0_i32 : i32
  }
}

</mosaic_0001>

<bundles_post_ra>
// kernel: tpu_custom_call.1
= control target key start
LH: loop header
LB: loop body
LE: loop exit
PB: predicated region body
PF: predicated region fallthrough
CT: control target
= control target key end

     0   :  { %s3786_s0 = inlined_call_operand.vmem [shape: f32[16,32], index: 0, kind: input, shape index: {}]   ;;  %s3787_s1 = inlined_call_operand.vmem [shape: f32[2,1,32], index: 1, kind: input, shape index: {}]   ;;  %s3788_s2 = inlined_call_operand.vmem [shape: f32[2,1,32], index: 2, kind: input, shape index: {}]   ;;  %s3789_s3 = inlined_call_operand.vmem [shape: bf16[2,32,96], index: 3, kind: input, shape index: {}]   ;;  %s3790_s4 = inlined_call_operand.vmem [shape: f32[2,1,96], index: 4, kind: input, shape index: {}]   ;;  %s3791_s5 = inlined_call_operand.vmem [shape: bf16[2,32,32], index: 5, kind: input, shape index: {}]   ;;  %s3792_s6 = inlined_call_operand.vmem [shape: f32[2,1,32], index: 6, kind: input, shape index: {}]   ;;  %s3793_s7 = inlined_call_operand.vmem [shape: f32[2,1,32], index: 7, kind: input, shape index: {}]   ;;  %s3794_s8 = inlined_call_operand.vmem [shape: f32[2,1,32], index: 8, kind: input, shape index: {}]   ;;  %s3795_s9 = inlined_call_operand.vmem [shape: bf16[2,32,258], index: 9, kind: input, shape index: {}]   ;;  %s3796_s10 = inlined_call_operand.vmem [shape: f32[2,1,258], index: 10, kind: input, shape index: {}]   ;;  %s3797_s11 = inlined_call_operand.vmem [shape: bf16[2,256,32], index: 11, kind: input, shape index: {}]   ;;  %s3798_s12 = inlined_call_operand.vmem [shape: f32[2,2,32], index: 12, kind: input, shape index: {}]   ;;  %s3799_s13 = inlined_call_operand.vmem [shape: f32[1,32], index: 13, kind: input, shape index: {}]   ;;  %s3800_s14 = inlined_call_operand.vmem [shape: f32[1,32], index: 14, kind: input, shape index: {}]   ;;  %s3801_s15 = inlined_call_operand.vmem [shape: bf16[32,128], index: 15, kind: input, shape index: {}]   ;;  %s3802_s16 = inlined_call_operand.hbm [shape: f32[16,128], index: 16, kind: output, shape index: {0}]   ;;  %s3803_s17 = inlined_call_operand.hbm [shape: f32[1], index: 17, kind: output, shape index: {1}]  }
   0x1   :  { %3809 = sst [smem:[#allocation10_spill]] %s3786_s0 }
   0x2   :  { %3810 = sst [smem:[#allocation11_spill]] %s3787_s1 }
   0x3   :  { %3811 = sst [smem:[#allocation12_spill]] %s3789_s3 }
   0x4   :  { %3812 = sst [smem:[#allocation13_spill]] %s3799_s13 }
   0x5   :  { %3813 = sst [smem:[#allocation14_spill]] %s3800_s14 }
   0x6   :  { %3814 = sst [smem:[#allocation15_spill]] %s3801_s15 }
   0x7   :  { %3815 = sst [smem:[#allocation16_spill]] %s3802_s16 }
   0x8   :  { %3816 = sst [smem:[#allocation17_spill]] %s3803_s17 }
   0x9   :  { %23 = vsyncpa [#allocation4], 0 }
   0xa   :  { %24 = vsyncpa [#allocation5], 0  ;;  %s3296_s24 = smov 0  }
   0xb LB: > { %3817 = sst [smem:[#allocation9_spill]] %s3186_s24  ;;  %s3302_s25 = sadd.s32 4294967295, %s3186_s24   ;;  %s3186_s24 = sphi %s3296_s24, %s30_s24  }
   0xc   : > { %p2693_p0 = scmp.ge.s32.totalorder %s3186_s24, 1  ;;  %p578_p1 = scmp.lt.s32.totalorder %s3186_s24, 3 }
   0xe   : > { %p579_p2 = pnand %p2693_p0, %p578_p1 }
   0xf   : > { %p666_p3 = scmp.lt.s32.totalorder (!%p579_p2), %s3302_s25, 1  ;;  %s3819_s3 = sld [smem:[#allocation12_spill]] (!%p579_p2) }
  0x10   : > { %582 = sbr.rel (%p579_p2) target bundleno = 4209 (0x1071), region = 84  ;;  %p2702_p4 = scmp.ne.s32.totalorder (!%p579_p2), %s3302_s25, 0 }
  0x17   : > { %s3308_s26 = scalar_select %p666_p3, %s3302_s25, 1 }
  0x18   : > { %716 = sbr.rel (%p2702_p4) target bundleno = 39 (0x27), region = 88  ;;  %vm719_vm0 = vcmask (!%p2702_p4), 261120  }
  0x19   : > { %s2771_s1 = sshll.u32 %s3308_s26, 4  ;;  %s687_s30 = scalar_lea.vmem %s3792_s6, %s3308_s26 }
  0x1a   : > { %s3326_s28 = scalar_lea.vmem %s3819_s3, %s2771_s1  ;;  %s3331_s16 = scalar_lea.vmem %s3791_s5, %s2771_s1 }
  0x1b   : > { %s2968_s23 = smul.u32 48, %s3308_s26  ;;  %s2773_s3 = sshll.u32 %s3308_s26, 7 }
  0x1c   : > { %s2969_s27 = smul.u32 3, %s3308_s26  ;;  %s3356_s0 = scalar_lea.vmem %s3797_s11, %s2773_s3 }
  0x1d   : > { %s3351_s17 = scalar_lea.vmem %s3795_s9, %s2968_s23  ;;  %s2701_s20 = sshll.u32 %s3308_s26, 1 }
  0x1e   : > { %s3361_s18 = scalar_lea.vmem %s3796_s10, %s2969_s27  ;;  %s3367_s14 = scalar_lea.vmem %s3798_s12, %s2701_s20 }
  0x1f   : > { %s3820_s23 = sld [smem:[#allocation10_spill]]  ;;  %s3188_s27 = smov 0.0  }
  0x20   : > { %723 = sst [smem:[#allocation6]] %s3188_s27 }
  0x25   : > { %v717_v0 = vld [vmem:[%s3820_s23] sm:$0xff]  ;;  %v718_v1 = vld [vmem:[%s3820_s23 + $0x8] sm:$0xff] }
  0x26   : > { %720 = vst.msk [vmem:[#allocation2] sm:$0xff] %vm719_vm0, %v717_v0  ;;  %721 = vst.msk [vmem:[#allocation2 + $0x8] sm:$0xff] %vm719_vm0, %v718_v1 }
  0x27 PF: > { %vm728_vm1 = vcmask 261120   ;;  %v3044_v16 = vld [vmem:[%s3326_s28] sm:$0xff]   ;;  %v3189_v17 = vmov 0.0   ;;  %v3045_v18 = vld [vmem:[%s3326_s28 + $0x8] sm:$0xff]   ;;  %vm3190_vm2 = vmmov 0   ;;  %s3821_s1 = sld [smem:[#allocation11_spill]]  ;;  %s3823_s21 = scalar_lea.vmem %s3788_s2, %s3308_s26 }
  0x28   : > { %2840 = vmatprep.subr.bf16.mxu1 %v3189_v17  ;;  %2866 = vmatprep.subr.bf16.mxu0 %v3189_v17  ;;  %v2704_v31 = vld [vmem:[%s3823_s21] ss:$0 sm:$0xff]  ;;  %s3824_s3 = scalar_lea.vmem %s3790_s4, %s3308_s26  ;;  %s3191_s24 = smov 112   ;;  %vm871_vm3 = vcmask 64512   ;;  %vm1370_vm4 = vcmask 1043456   ;;  %vm1776_vm5 = vcmask 130048  }
  0x29   : > { %2841 = vmatpush3.bf16.msra.mxu1 %v3044_v16  ;;  %2844 = vmatprep.mubr.msk.bf16.mxu1 %vm3190_vm2, %v3189_v17  ;;  %v2705_v36 = vld [vmem:[%s3824_s3] ss:$0 sm:$0xff]  ;;  %s3192_s27 = smov 120   ;;  %s3193_s22 = smov 104   ;;  %vm1779_vm6 = vcmask 195584   ;;  %vm2077_vm7 = vcmask 15360  }
  0x2a   : > { %2842 = vmatprep.subr.bf16.mxu1 %v3189_v17  ;;  %2868 = vmatprep.mubr.msk.bf16.mxu0 %vm3190_vm2, %v3189_v17  ;;  %s3194_s28 = smov 96   ;;  %s3197_s19 = smov 16  }
  0x2b   : > { %s3198_s20 = smov 24   ;;  %s3825_s13 = scalar_lea.vmem %s3793_s7, %s3308_s26 }
  0x2c   : > { %p2759_p5 = scmp.ne.s32.totalorder %s3302_s25, 1 }
  0x2d   : > { %v3376_v2 = vld [vmem:[#allocation2] sm:$0xff]  ;;  %v3378_v3 = vld [vmem:[#allocation2 + $0x8] sm:$0xff]  ;;  %2843 = vmatpush3.bf16.msra.mxu1 %v3045_v18  ;;  %s3822_s29 = scalar_lea.vmem %s3821_s1, %s3308_s26  ;;  %s3195_s1 = smov 64   ;;  %vm3202_vm14 = vmmov (!%p2759_p5), 0  }
  0x2e   : > { %v729_v4 = vsel %vm728_vm1, %v3376_v2, 0.0  ;;  %v732_v5 = vsel %vm728_vm1, %v3378_v3, 0.0  ;;  %2848 = vmatprep.subr.bf16.mxu1 %v3189_v17  ;;  %v2703_v27 = vld [vmem:[%s3822_s29] ss:$0 sm:$0xff]  ;;  %s3196_s29 = smov 8   ;;  %s3828_s21 = sld [smem:[#allocation13_spill]] (!%p2759_p5) }
  0x2f   : > { %730 = vadd.xlane.f32.xlu0 %v729_v4 }
  0x33   : > { %733 = vadd.xlane.f32.xlu0 %v732_v5 }
  0xbc   : > { %v731_v6 = vpop.xlane.xlu0 %730 }
  0xbd   : > { %v736_v7 = vmul.f32 0.03125, %v731_v6 }
  0xbf   : > { %v738_v8 = vsub.f32 %v3376_v2, %v736_v7 }
  0xc0   : > { %v734_v9 = vpop.xlane.xlu0 %733 }
  0xc1   : > { %v737_v10 = vmul.f32 0.03125, %v734_v9  ;;  %v740_v11 = vmul.f32 %v738_v8, %v738_v8 }
  0xc3   : > { %v739_v12 = vsub.f32 %v3378_v3, %v737_v10  ;;  %v742_v13 = vsel %vm728_vm1, %v740_v11, 0.0 }
  0xc4   : > { %743 = vadd.xlane.f32.xlu1 %v742_v13 }
  0xc5   : > { %v741_v14 = vmul.f32 %v739_v12, %v739_v12 }
  0xc7   : > { %v745_v15 = vsel %vm728_vm1, %v741_v14, 0.0 }
  0xc8   : > { %746 = vadd.xlane.f32.xlu1 %v745_v15 }
 0x151   : > { %v744_v19 = vpop.xlane.xlu1 %743 }
 0x152   : > { %v748_v20 = vmul.f32 0.03125, %v744_v19 }
 0x154   : > { %v750_v21 = vadd.f32 1e-05, %v748_v20 }
 0x155   : > { %v747_v22 = vpop.xlane.xlu1 %746 }
 0x156   : > { %3072 = vrsqrt.f32 %v750_v21  ;;  %v749_v23 = vmul.f32 0.03125, %v747_v22 }
 0x158   : > { %v751_v24 = vadd.f32 1e-05, %v749_v23 }
 0x15a   : > { %3074 = vrsqrt.f32 %v751_v24 }
 0x160   : > { %v3073_v25 = vpop.eup %3072 }
 0x161   : > { %v754_v26 = vmul.f32 %v3073_v25, %v738_v8 }
 0x163   : > { %v762_v30 = vmul.f32 %v2703_v27, %v754_v26 }
 0x164   : > { %v3075_v28 = vpop.eup %3074 }
 0x165   : > { %v755_v29 = vmul.f32 %v3075_v28, %v739_v12  ;;  %v770_v33 = vadd.f32 %v2704_v31, %v762_v30 }
 0x167   : > { %v763_v32 = vmul.f32 %v2703_v27, %v755_v29 }
 0x169   : > { %v771_v34 = vadd.f32 %v2704_v31, %v763_v32 }
 0x16b   : > { %v772_v35 = vpack.c.bf16 %v771_v34, %v770_v33 }
 0x16d   : > { %2845 = vmatmul.mubr.msk.bf16.vlgmr.msra.gmra.mrb[0].mxu1 %vm728_vm1, %v772_v35 }
 0x16e   : > { %2850 = vmatprep.mubr.msk.bf16.mxu1 %vm3190_vm2, %v3189_v17 }
 0x240   : > { %v833_v37 = vpop.f32.mrb[0].mxu1 }
 0x241   : > { %v2846_v38 = vpop.f32.mrb[1].mxu1  ;;  %v834_v40 = vadd.f32 %v2705_v36, %v833_v37 }
 0x242   : > { %v836_v39 = vpop.f32.mrb[2].mxu1 }
 0x243   : > { %v837_v41 = vadd.f32 %v2705_v36, %v836_v39  ;;  %v2847_v42 = vpop.f32.mrb[3].mxu1  ;;  %v860_v45 = vpack.c.bf16 %v834_v40, %v834_v40 }
 0x245   : > { %v3015_v43 = vpack.i.bf16 %v837_v41, %v834_v40  ;;  %v3416_v44 = vpack.c.bf16 %v837_v41, %v837_v41 }
 0x247   : > { %3016 = vrot.lane.b32.xlu1 %v3015_v43, %s3191_s24  ;;  %3011 = vrot.lane.b32.xlu0 %v3015_v43, %s3192_s27  ;;  %s3826_s24 = scalar_lea.vmem %s3794_s8, %s3308_s26  ;;  %s2384_s26 = sld [smem:[#allocation6]] }
 0x24b   : > { %3021 = vrot.lane.b32.xlu1 %v3015_v43, %s3193_s22  ;;  %919 = vrot.lane.b32.xlu0 %v3416_v44, %s3194_s28 }
 0x24f   : > { %869 = vrot.lane.b32.xlu1 %v860_v45, %s3194_s28 }
 0x2b9   : > { %v3017_v46 = vpop.permute.xlu1 %3016  ;;  %v3012_v47 = vpop.permute.xlu0 %3011 }
 0x2ba   : > { %v3014_v48 = vunpack.i.h.bf16 %v3012_v47  ;;  %v3013_v49 = vunpack.i.l.bf16 %v3012_v47  ;;  %v3019_v50 = vunpack.i.h.bf16 %v3017_v46  ;;  %v3018_v51 = vunpack.i.l.bf16 %v3017_v46 }
 0x2bc   : > { %v3419_v52 = vpack.c.bf16 %v3014_v48, %v3014_v48  ;;  %v3421_v53 = vpack.c.bf16 %v3013_v49, %v3013_v49  ;;  %v3425_v55 = vpack.c.bf16 %v3019_v50, %v3019_v50  ;;  %v3427_v56 = vpack.c.bf16 %v3018_v51, %v3018_v51 }
 0x2bd   : > { %v3022_v54 = vpop.permute.xlu1 %3021  ;;  %v920_v63 = vpop.permute.xlu0 %919 }
 0x2be   : > { %968 = vrot.lane.b32.xlu1 %v3421_v53, %s3194_s28  ;;  %1017 = vrot.lane.b32.xlu0 %v3419_v52, %s3194_s28  ;;  %v3024_v57 = vunpack.i.h.bf16 %v3022_v54  ;;  %v3023_v58 = vunpack.i.l.bf16 %v3022_v54  ;;  %v925_v0 = vsel %vm871_vm3, %v920_v63, 0 }
 0x2c0   : > { %v3432_v61 = vpack.c.bf16 %v3024_v57, %v3024_v57  ;;  %v3434_v62 = vpack.c.bf16 %v3023_v58, %v3023_v58 }
 0x2c1   : > { %v870_v59 = vpop.permute.xlu1 %869 }
 0x2c2   : > { %v876_v60 = vsel %vm871_vm3, %v870_v59, 0  ;;  %1066 = vrot.lane.b32.xlu1 %v3427_v56, %s3194_s28  ;;  %1115 = vrot.lane.b32.xlu0 %v3425_v55, %s3194_s28 }
 0x2c3   : > { %2849 = vmatpush3.bf16.xpose.msra.mxu1 %v876_v60 }
 0x2c4   : > { %2854 = vmatprep.subr.bf16.mxu1 %v3189_v17 }
 0x2c6   : > { %1164 = vrot.lane.b32.xlu1 %v3434_v62, %s3194_s28  ;;  %1213 = vrot.lane.b32.xlu0 %v3432_v61, %s3194_s28  ;;  %s3827_s28 = sld [smem:[#allocation15_spill]] (!%p2759_p5) }
 0x2ca   : > { %2851 = vmatmul.mubr.msk.bf16.vlgmr.msra.gmra.mrb[4].mxu1 %vm871_vm3, %v860_v45  ;;  %1365 = vrot.lane.b32.xlu1 %v860_v45, %s3195_s1 }
 0x2cb   : > { %2855 = vmatpush3.bf16.xpose.msra.mxu1 %v925_v0  ;;  %2856 = vmatprep.mubr.msk.bf16.mxu1 %vm3190_vm2, %v3189_v17 }
 0x2cc   : > { %2860 = vmatprep.subr.bf16.mxu1 %v3189_v17 }
 0x2d2   : > { %2857 = vmatmul.mubr.msk.bf16.vlgmr.msra.gmra.mrb[8].mxu1 %vm871_vm3, %v3416_v44 }
 0x2d3   : > { %2862 = vmatprep.mubr.msk.bf16.mxu1 %vm3190_vm2, %v3189_v17 }
 0x330   : > { %v969_v1 = vpop.permute.xlu1 %968  ;;  %v1018_v4 = vpop.permute.xlu0 %1017 }
 0x331   : > { %v974_v5 = vsel %vm871_vm3, %v969_v1, 0  ;;  %v1023_v6 = vsel %vm871_vm3, %v1018_v4, 0 }
 0x332   : > { %2861 = vmatpush3.bf16.xpose.msra.mxu1 %v974_v5  ;;  %2867 = vmatpush3.bf16.xpose.msra.mxu0 %v1023_v6 }
 0x333   : > { %2872 = vmatprep.subr.bf16.mxu1 %v3189_v17  ;;  %2878 = vmatprep.subr.bf16.mxu0 %v3189_v17 }
 0x334   : > { %v1067_v7 = vpop.permute.xlu1 %1066  ;;  %v1116_v8 = vpop.permute.xlu0 %1115 }
 0x335   : > { %v1072_v9 = vsel %vm871_vm3, %v1067_v7, 0  ;;  %v1121_v10 = vsel %vm871_vm3, %v1116_v8, 0 }
 0x338   : > { %v1165_v11 = vpop.permute.xlu1 %1164  ;;  %v1214_v12 = vpop.permute.xlu0 %1213 }
 0x339   : > { %2863 = vmatmul.mubr.msk.bf16.vlgmr.msra.gmra.mrb[12].mxu1 %vm871_vm3, %v3421_v53  ;;  %2869 = vmatmul.mubr.msk.bf16.vlgmr.msra.gmra.mrb[0].mxu0 %vm871_vm3, %v3419_v52  ;;  %v1170_v13 = vsel %vm871_vm3, %v1165_v11, 0  ;;  %v1219_v14 = vsel %vm871_vm3, %v1214_v12, 0 }
 0x33a   : > { %2873 = vmatpush3.bf16.xpose.msra.mxu1 %v1072_v9  ;;  %2879 = vmatpush3.bf16.xpose.msra.mxu0 %v1121_v10 }
 0x33b   : > { %2874 = vmatprep.mubr.msk.bf16.mxu1 %vm3190_vm2, %v3189_v17  ;;  %2880 = vmatprep.mubr.msk.bf16.mxu0 %vm3190_vm2, %v3189_v17 }
 0x33c   : > { %2884 = vmatprep.subr.bf16.mxu1 %v3189_v17  ;;  %2890 = vmatprep.subr.bf16.mxu0 %v3189_v17  ;;  %v1366_v15 = vpop.permute.xlu1 %1365 }
 0x33d   : > { %v1372_v16 = vsel %vm1370_vm4, %v1366_v15, 0 }
 0x341   : > { %2875 = vmatmul.mubr.msk.bf16.vlgmr.msra.gmra.mrb[16].mxu1 %vm871_vm3, %v3427_v56  ;;  %2881 = vmatmul.mubr.msk.bf16.vlgmr.msra.gmra.mrb[4].mxu0 %vm871_vm3, %v3425_v55 }
 0x342   : > { %2885 = vmatpush3.bf16.xpose.msra.mxu1 %v1170_v13  ;;  %2891 = vmatpush3.bf16.xpose.msra.mxu0 %v1219_v14 }
 0x343   : > { %2886 = vmatprep.mubr.msk.bf16.mxu1 %vm3190_vm2, %v3189_v17  ;;  %2892 = vmatprep.mubr.msk.bf16.mxu0 %vm3190_vm2, %v3189_v17 }
 0x344   : > { %2896 = vmatprep.subr.bf16.mxu1 %v3189_v17  ;;  %2902 = vmatprep.subr.bf16.mxu0 %v3189_v17 }
 0x349   : > { %2887 = vmatmul.mubr.msk.bf16.vlgmr.msra.gmra.mrb[20].mxu1 %vm871_vm3, %v3434_v62  ;;  %2893 = vmatmul.mubr.msk.bf16.vlgmr.msra.gmra.mrb[8].mxu0 %vm871_vm3, %v3432_v61 }
 0x34a   : > { %2897 = vmatpush3.bf16.msra.mxu1 %v1372_v16  ;;  %2904 = vmatprep.mubr.msk.bf16.mxu0 %vm3190_vm2, %v3189_v17 }
 0x34b   : > { %2898 = vmatprep.mubr.msk.bf16.mxu1 %vm3190_vm2, %v3189_v17  ;;  %2908 = vmatprep.subr.bf16.mxu1 %v3189_v17 }
 0x39d   : > { %v912_v18 = vpop.f32.mrb[4].mxu1 }
 0x39e   : > { %v3487_v19 = vmul.f32 0.35355338, %v912_v18  ;;  %v2852_v20 = vpop.f32.mrb[5].mxu1 }
 0x39f   : > { %v915_v21 = vpop.f32.mrb[6].mxu1 }
 0x3a0   : > { %v2853_v22 = vpop.f32.mrb[7].mxu1  ;;  %v1269_v23 = vsel %vm871_vm3, %v3487_v19, -inf }
 0x3a1   : > { %1270 = vmax.xlane.f32.xlu1 %v1269_v23 }
 0x3a5   : > { %v961_v24 = vpop.f32.mrb[8].mxu1 }
 0x3a6   : > { %v1262_v25 = vmul.f32 0.35355338, %v961_v24  ;;  %v2858_v26 = vpop.f32.mrb[9].mxu1 }
 0x3a7   : > { %v964_v27 = vpop.f32.mrb[10].mxu1 }
 0x3a8   : > { %v2859_v28 = vpop.f32.mrb[11].mxu1  ;;  %v1272_v29 = vsel %vm871_vm3, %v1262_v25, -inf }
 0x3a9   : > { %1273 = vmax.xlane.f32.xlu0 %v1272_v29 }
 0x40c   : > { %v1010_v30 = vpop.f32.mrb[12].mxu1  ;;  %v1059_v31 = vpop.f32.mrb[0].mxu0 }
 0x40d   : > { %v1263_v32 = vmul.f32 0.35355338, %v1010_v30  ;;  %v2864_v33 = vpop.f32.mrb[13].mxu1  ;;  %v2870_v34 = vpop.f32.mrb[1].mxu0  ;;  %v1264_v37 = vmul.f32 0.35355338, %v1059_v31 }
 0x40e   : > { %v1013_v35 = vpop.f32.mrb[14].mxu1  ;;  %v1062_v36 = vpop.f32.mrb[2].mxu0 }
 0x40f   : > { %v2865_v38 = vpop.f32.mrb[15].mxu1  ;;  %v2871_v39 = vpop.f32.mrb[3].mxu0  ;;  %v1275_v40 = vsel %vm871_vm3, %v1263_v32, -inf  ;;  %v1278_v41 = vsel %vm871_vm3, %v1264_v37, -inf }
 0x410   : > { %1276 = vmax.xlane.f32.xlu0 %v1275_v40 }
 0x414   : > { %v1157_v42 = vpop.f32.mrb[4].mxu0  ;;  %1279 = vmax.xlane.f32.xlu0 %v1278_v41  ;;  %v1108_v43 = vpop.f32.mrb[16].mxu1 }
 0x415   : > { %v3494_v45 = vmul.f32 0.35355338, %v1157_v42  ;;  %v1265_v46 = vmul.f32 0.35355338, %v1108_v43  ;;  %v2876_v47 = vpop.f32.mrb[17].mxu1  ;;  %v2882_v48 = vpop.f32.mrb[5].mxu0 }
 0x416   : > { %v1111_v49 = vpop.f32.mrb[18].mxu1  ;;  %v1160_v50 = vpop.f32.mrb[6].mxu0 }
 0x417   : > { %v2877_v51 = vpop.f32.mrb[19].mxu1  ;;  %v2883_v54 = vpop.f32.mrb[7].mxu0  ;;  %v1284_v57 = vsel %vm871_vm3, %v3494_v45, -inf  ;;  %v1281_v58 = vsel %vm871_vm3, %v1265_v46, -inf }
 0x418   : > { %1285 = vmax.xlane.f32.xlu0 %v1284_v57  ;;  %1282 = vmax.xlane.f32.xlu1 %v1281_v58 }
 0x41c   : > { %v1206_v59 = vpop.f32.mrb[20].mxu1  ;;  %v1255_v60 = vpop.f32.mrb[8].mxu0 }
 0x41d   : > { %v1267_v63 = vmul.f32 0.35355338, %v1206_v59  ;;  %v3499_v0 = vmul.f32 0.35355338, %v1255_v60  ;;  %v2888_v1 = vpop.f32.mrb[21].mxu1  ;;  %v2894_v4 = vpop.f32.mrb[9].mxu0 }
 0x41e   : > { %v1209_v5 = vpop.f32.mrb[22].mxu1  ;;  %v1258_v6 = vpop.f32.mrb[10].mxu0 }
 0x41f   : > { %v2889_v7 = vpop.f32.mrb[23].mxu1  ;;  %v2895_v8 = vpop.f32.mrb[11].mxu0  ;;  %v1290_v9 = vsel %vm871_vm3, %v3499_v0, -inf  ;;  %v1287_v10 = vsel %vm871_vm3, %v1267_v63, -inf }
 0x420   : > { %1291 = vmax.xlane.f32.xlu0 %v1290_v9  ;;  %1288 = vmax.xlane.f32.xlu1 %v1287_v10 }
 0x42e   : > { %v1271_v13 = vpop.xlane.xlu1 %1270 }
 0x42f   : > { %v1293_v14 = vsub.f32 %v3487_v19, %v1271_v13 }
 0x431   : > { %1462 = vrot.lane.b32.xlu1 %v3421_v53, %s3195_s1  ;;  %v1301_v16 = vmul.f32 1.442695, %v1293_v14 }
 0x435   : > { %1510 = vrot.lane.b32.xlu1 %v3419_v52, %s3195_s1 }
 0x436   : > { %1414 = vrot.lane.b32.xlu0 %v3416_v44, %s3195_s1  ;;  %v1274_v11 = vpop.xlane.xlu0 %1273 }
 0x437   : > { %v1294_v12 = vsub.f32 %v1262_v25, %v1274_v11 }
 0x439   : > { %v1303_v15 = vmul.f32 1.442695, %v1294_v12 }
 0x43b   : > { %3076 = vpow2.f32 %v1303_v15 }
 0x43c   : > { %3078 = vpow2.f32 %v1301_v16 }
 0x445   : > { %v3077_v18 = vpop.eup %3076 }
 0x446   : > { %v1320_v20 = vsel %vm871_vm3, %v3077_v18, 0.0  ;;  %v3512_v21 = vpop.eup %3078 }
 0x447   : > { %v1317_v52 = vsel %vm871_vm3, %v3512_v21, 0.0 }
 0x455   : > { %1321 = vadd.xlane.f32.xlu0 %v1320_v20 }
 0x459   : > { %1318 = vadd.xlane.f32.xlu1 %v1317_v52 }
 0x46a   : > { %1558 = vrot.lane.b32.xlu1 %v3427_v56, %s3195_s1 }
 0x49d   : > { %v1277_v44 = vpop.xlane.xlu0 %1276 }
 0x49e   : > { %v1295_v53 = vsub.f32 %v1263_v32, %v1277_v44 }
 0x4a0   : > { %v1305_v19 = vmul.f32 1.442695, %v1295_v53 }
 0x4a1   : > { %v1280_v22 = vpop.xlane.xlu0 %1279 }
 0x4a2   : > { %3080 = vpow2.f32 %v1305_v19  ;;  %v1296_v23 = vsub.f32 %v1264_v37, %v1280_v22 }
 0x4a4   : > { %v1307_v24 = vmul.f32 1.442695, %v1296_v23 }
 0x4a5   : > { %v1283_v25 = vpop.xlane.xlu1 %1282  ;;  %v1286_v28 = vpop.xlane.xlu0 %1285 }
 0x4a6   : > { %3082 = vpow2.f32 %v1307_v24  ;;  %v1297_v26 = vsub.f32 %v1265_v46, %v1283_v25  ;;  %v1298_v42 = vsub.f32 %v3494_v45, %v1286_v28 }
 0x4a8   : > { %v1309_v27 = vmul.f32 1.442695, %v1297_v26  ;;  %v1311_v43 = vmul.f32 1.442695, %v1298_v42 }
 0x4aa   : > { %3084 = vpow2.f32 %v1309_v27 }
 0x4ac   : > { %v3518_v29 = vpop.eup %3080 }
 0x4ad   : > { %v1292_v30 = vpop.xlane.xlu0 %1291  ;;  %v1289_v31 = vpop.xlane.xlu1 %1288  ;;  %v1323_v56 = vsel %vm871_vm3, %v3518_v29, 0.0 }
 0x4ae   : > { %v1299_v33 = vsub.f32 %v1267_v63, %v1289_v31  ;;  %1324 = vadd.xlane.f32.xlu1 %v1323_v56  ;;  %v1300_v46 = vsub.f32 %v3499_v0, %v1292_v30 }
 0x4b0   : > { %v3522_v32 = vpop.eup %3082  ;;  %v1313_v34 = vmul.f32 1.442695, %v1299_v33  ;;  %v1315_v47 = vmul.f32 1.442695, %v1300_v46 }
 0x4b1   : > { %v1415_v35 = vpop.permute.xlu0 %1414  ;;  %v1326_v36 = vsel %vm871_vm3, %v3522_v32, 0.0  ;;  %v1463_v48 = vpop.permute.xlu1 %1462 }
 0x4b2   : > { %v1420_v37 = vsel %vm1370_vm4, %v1415_v35, 0  ;;  %1327 = vadd.xlane.f32.xlu0 %v1326_v36  ;;  %3086 = vpow2.f32 %v1313_v34  ;;  %v1468_v4 = vsel %vm1370_vm4, %v1463_v48, 0 }
 0x4b3   : > { %2903 = vmatpush3.bf16.msra.mxu0 %v1420_v37  ;;  %3088 = vpow2.f32 %v1311_v43 }
 0x4b4   : > { %2914 = vmatprep.subr.bf16.mxu0 %v3189_v17  ;;  %v3528_v38 = vpop.eup %3084  ;;  %3090 = vpow2.f32 %v1315_v47 }
 0x4b5   : > { %v1329_v39 = vsel %vm871_vm3, %v3528_v38, 0.0  ;;  %v1511_v49 = vpop.permute.xlu1 %1510 }
 0x4b6   : > { %1330 = vadd.xlane.f32.xlu1 %v1329_v39  ;;  %v1516_v63 = vsel %vm1370_vm4, %v1511_v49, 0 }
 0x4bc   : > { %v3532_v40 = vpop.eup %3086 }
 0x4bd   : > { %v1335_v41 = vsel %vm871_vm3, %v3532_v40, 0.0  ;;  %v3542_v51 = vpop.eup %3088 }
 0x4be   : > { %1336 = vadd.xlane.f32.xlu1 %v1335_v41  ;;  %v3546_v57 = vpop.eup %3090 }
 0x4c8   : > { %1606 = vrot.lane.b32.xlu0 %v3425_v55, %s3195_s1  ;;  %v1332_v55 = vsel %vm871_vm3, %v3542_v51, 0.0 }
 0x4cf   : > { %1654 = vrot.lane.b32.xlu1 %v3434_v62, %s3195_s1  ;;  %v1338_v62 = vsel %vm871_vm3, %v3546_v57, 0.0 }
 0x4e2   : > { %v1322_v50 = vpop.xlane.xlu0 %1321 }
 0x4e3   : > { %3092 = vrcp.f32 %v1322_v50 }
 0x4e6   : > { %v1319_v54 = vpop.xlane.xlu1 %1318 }
 0x4e7   : > { %3094 = vrcp.f32 %v1319_v54  ;;  %1333 = vadd.xlane.f32.xlu0 %v1332_v55 }
 0x4ea   : > { %v1559_v5 = vpop.permute.xlu1 %1558 }
 0x4eb   : > { %1339 = vadd.xlane.f32.xlu0 %v1338_v62  ;;  %v1564_v13 = vsel %vm1370_vm4, %v1559_v5, 0 }
 0x4ed   : > { %v3093_v45 = vpop.eup %3092 }
 0x4ee   : > { %v1350_v58 = vmul.f32 %v3093_v45, %v3077_v18 }
 0x4f0   : > { %v1358_v59 = vpack.c.bf16 %v1350_v58, %v1350_v58 }
 0x4f1   : > { %v3095_v60 = vpop.eup %3094 }
 0x4f2   : > { %v1349_v0 = vmul.f32 %v3095_v60, %v3512_v21  ;;  %2905 = vmatmul.mubr.msk.bf16.vlgmr.msra.gmra.mrb[12].mxu0 %vm871_vm3, %v1358_v59 }
 0x4f3   : > { %2915 = vmatpush3.bf16.msra.mxu0 %v1516_v63  ;;  %2916 = vmatprep.mubr.msk.bf16.mxu0 %vm3190_vm2, %v3189_v17  ;;  %v3046_v63 = vld [vmem:[%s3331_s16] sm:$0xff]  }
 0x4f4   : > { %v1357_v1 = vpack.c.bf16 %v1349_v0, %v1349_v0  ;;  %2926 = vmatprep.subr.bf16.mxu0 %v3189_v17 }
 0x4f6   : > { %2899 = vmatmul.mubr.msk.bf16.vlgmr.msra.gmra.mrb[24].mxu1 %vm871_vm3, %v1357_v1  ;;  %v3047_v1 = vld [vmem:[%s3331_s16 + $0x8] sm:$0xff]  }
 0x4f7   : > { %2909 = vmatpush3.bf16.msra.mxu1 %v1468_v4  ;;  %2910 = vmatprep.mubr.msk.bf16.mxu1 %vm3190_vm2, %v3189_v17 }
 0x4f8   : > { %2920 = vmatprep.subr.bf16.mxu1 %v3189_v17 }
 0x501   : > { %1702 = vrot.lane.b32.xlu0 %v3432_v61, %s3195_s1 }
 0x53b   : > { %v1325_v6 = vpop.xlane.xlu1 %1324 }
 0x53c   : > { %3096 = vrcp.f32 %v1325_v6 }
 0x53f   : > { %v1328_v7 = vpop.xlane.xlu0 %1327 }
 0x540   : > { %3098 = vrcp.f32 %v1328_v7 }
 0x543   : > { %v1331_v8 = vpop.xlane.xlu1 %1330  ;;  %v1607_v15 = vpop.permute.xlu0 %1606 }
 0x544   : > { %3100 = vrcp.f32 %v1331_v8  ;;  %v1612_v20 = vsel %vm1370_vm4, %v1607_v15, 0 }
 0x546   : > { %v3097_v9 = vpop.eup %3096 }
 0x547   : > { %v1351_v10 = vmul.f32 %v3097_v9, %v3518_v29 }
 0x549   : > { %v1359_v11 = vpack.c.bf16 %v1351_v10, %v1351_v10 }
 0x54a   : > { %v3099_v12 = vpop.eup %3098 }
 0x54b   : > { %v1352_v14 = vmul.f32 %v3099_v12, %v3522_v32  ;;  %2911 = vmatmul.mubr.msk.bf16.vlgmr.msra.gmra.mrb[28].mxu1 %vm871_vm3, %v1359_v11  ;;  %v1337_v61 = vpop.xlane.xlu1 %1336 }
 0x54c   : > { %2921 = vmatpush3.bf16.msra.mxu1 %v1564_v13  ;;  %2922 = vmatprep.mubr.msk.bf16.mxu1 %vm3190_vm2, %v3189_v17  ;;  %3102 = vrcp.f32 %v1337_v61 }
 0x54d   : > { %v1360_v16 = vpack.c.bf16 %v1352_v14, %v1352_v14  ;;  %2932 = vmatprep.subr.bf16.mxu1 %v3189_v17 }
 0x54e   : > { %v3101_v18 = vpop.eup %3100 }
 0x54f   : > { %2917 = vmatmul.mubr.msk.bf16.vlgmr.msra.gmra.mrb[16].mxu0 %vm871_vm3, %v1360_v16  ;;  %v1353_v21 = vmul.f32 %v3101_v18, %v3528_v38  ;;  %v1655_v52 = vpop.permute.xlu1 %1654 }
 0x550   : > { %2927 = vmatpush3.bf16.msra.mxu0 %v1612_v20  ;;  %2928 = vmatprep.mubr.msk.bf16.mxu0 %vm3190_vm2, %v3189_v17  ;;  %v1660_v53 = vsel %vm1370_vm4, %v1655_v52, 0 }
 0x551   : > { %2938 = vmatprep.subr.bf16.mxu0 %v3189_v17  ;;  %v1361_v44 = vpack.c.bf16 %v1353_v21, %v1353_v21 }
 0x553   : > { %2923 = vmatmul.mubr.msk.bf16.vlgmr.msra.gmra.mrb[32].mxu1 %vm871_vm3, %v1361_v44 }
 0x554   : > { %2933 = vmatpush3.bf16.msra.mxu1 %v1660_v53  ;;  %2934 = vmatprep.mubr.msk.bf16.mxu1 %vm3190_vm2, %v3189_v17 }
 0x555   : > { %2944 = vmatprep.subr.bf16.mxu1 %v3189_v17 }
 0x556   : > { %v3103_v19 = vpop.eup %3102 }
 0x557   : > { %v1355_v22 = vmul.f32 %v3103_v19, %v3532_v40 }
 0x559   : > { %v1363_v23 = vpack.c.bf16 %v1355_v22, %v1355_v22 }
 0x55b   : > { %2935 = vmatmul.mubr.msk.bf16.vlgmr.msra.gmra.mrb[36].mxu1 %vm871_vm3, %v1363_v23 }
 0x55c   : > { %2948 = vmatprep.mubr.msk.bf16.mxu1 %vm3190_vm2, %v3189_v17  ;;  %2945 = vmatpush3.bf16.msra.mxu1 %v3046_v63 }
 0x55d   : > { %2946 = vmatprep.subr.bf16.mxu1 %v3189_v17 }
 0x560   : > { %2947 = vmatpush3.bf16.msra.mxu1 %v3047_v1 }
 0x561   : > { %2952 = vmatprep.subr.bf16.mxu1 %v3189_v17 }
 0x574   : > { %v1334_v24 = vpop.xlane.xlu0 %1333 }
 0x575   : > { %3104 = vrcp.f32 %v1334_v24 }
 0x578   : > { %v1340_v25 = vpop.xlane.xlu0 %1339 }
 0x579   : > { %3106 = vrcp.f32 %v1340_v25 }
 0x57c   : > { %v1703_v28 = vpop.permute.xlu0 %1702 }
 0x57d   : > { %v1708_v31 = vsel %vm1370_vm4, %v1703_v28, 0 }
 0x57f   : > { %v3105_v26 = vpop.eup %3104 }
 0x580   : > { %v1354_v27 = vmul.f32 %v3105_v26, %v3542_v51  ;;  %v2725_v26 = vld [vmem:[%s687_s30] ss:$0 sm:$0xff] }
 0x582   : > { %v1362_v29 = vpack.c.bf16 %v1354_v27, %v1354_v27 }
 0x583   : > { %v3107_v30 = vpop.eup %3106 }
 0x584   : > { %2929 = vmatmul.mubr.msk.bf16.vlgmr.msra.gmra.mrb[20].mxu0 %vm871_vm3, %v1362_v29  ;;  %v1356_v56 = vmul.f32 %v3107_v30, %v3546_v57 }
 0x585   : > { %2939 = vmatpush3.bf16.msra.mxu0 %v1708_v31  ;;  %2940 = vmatprep.mubr.msk.bf16.mxu0 %vm3190_vm2, %v3189_v17 }
 0x586   : > { %v1364_v33 = vpack.c.bf16 %v1356_v56, %v1356_v56 }
 0x58c   : > { %2941 = vmatmul.mubr.msk.bf16.vlgmr.msra.gmra.mrb[24].mxu0 %vm871_vm3, %v1364_v33 }
 0x5c5   : > { %v1456_v32 = vpop.f32.mrb[12].mxu0 }
 0x5c6   : > { %v2906_v34 = vpop.f32.mrb[13].mxu0 }
 0x5c7   : > { %v1459_v35 = vpop.f32.mrb[14].mxu0 }
 0x5c8   : > { %v2907_v36 = vpop.f32.mrb[15].mxu0 }
 0x5c9   : > { %v1408_v37 = vpop.f32.mrb[24].mxu1 }
 0x5ca   : > { %v2900_v38 = vpop.f32.mrb[25].mxu1 }
 0x5cb   : > { %v1411_v39 = vpop.f32.mrb[26].mxu1 }
 0x5cc   : > { %v2901_v40 = vpop.f32.mrb[27].mxu1 }
 0x61e   : > { %v1504_v41 = vpop.f32.mrb[28].mxu1 }
 0x61f   : > { %v2912_v42 = vpop.f32.mrb[29].mxu1 }
 0x620   : > { %v1507_v43 = vpop.f32.mrb[30].mxu1 }
 0x621   : > { %v2913_v46 = vpop.f32.mrb[31].mxu1 }
 0x622   : > { %v1552_v47 = vpop.f32.mrb[16].mxu0  ;;  %v3050_v46 = vld [vmem:[%s3351_s17 + $0x4] ss:$12 sps:$4 sm:$0xff]  }
 0x623   : > { %v3025_v48 = vpack.i.bf16 %v1552_v47, %v1504_v41  ;;  %v2918_v49 = vpop.f32.mrb[17].mxu0  ;;  %v3048_v47 = vld [vmem:[%s3351_s17] ss:$12 sps:$4 sm:$0xff]   ;;  %1957 = vmatprep.subr.bf16.mxu0 %v3050_v46 }
 0x624   : > { %v1555_v50 = vpop.f32.mrb[18].mxu0  ;;  %v3054_v49 = vld [vmem:[%s3351_s17 + $0x1c] ss:$12 sps:$4 sm:$0xff]   ;;  %1958 = vmatpush1.bf16.msra.mxu0 %v3048_v47 }
 0x625   : > { %v2919_v51 = vpop.f32.mrb[19].mxu0  ;;  %3026 = vrot.lane.b32.xlu1 %v3025_v48, %s3196_s29  ;;  %v3051_v48 = vld [vmem:[%s3351_s17 + $0x8] ss:$12 sps:$4 sm:$0xff]   ;;  %v3052_v50 = vld [vmem:[%s3351_s17 + $0x18] ss:$12 sps:$4 sm:$0xff]   ;;  %1959 = vmatprep.subr.bf16.mxu0 %v3054_v49 }
 0x626   : > { %v1600_v54 = vpop.f32.mrb[32].mxu1  ;;  %v3055_v51 = vld [vmem:[%s3351_s17 + $0x20] ss:$12 sps:$4 sm:$0xff]  }
 0x627   : > { %v2924_v55 = vpop.f32.mrb[33].mxu1 }
 0x628   : > { %v1603_v57 = vpop.f32.mrb[34].mxu1  ;;  %1960 = vmatpush1.bf16.msra.mxu0 %v3052_v50 }
 0x629   : > { %v2925_v62 = vpop.f32.mrb[35].mxu1 }
 0x62e   : > { %v1696_v45 = vpop.f32.mrb[36].mxu1 }
 0x62f   : > { %v2936_v58 = vpop.f32.mrb[37].mxu1 }
 0x630   : > { %v1699_v59 = vpop.f32.mrb[38].mxu1 }
 0x631   : > { %v2937_v60 = vpop.f32.mrb[39].mxu1 }
 0x657   : > { %v1648_v0 = vpop.f32.mrb[20].mxu0 }
 0x658   : > { %v3030_v4 = vpack.i.bf16 %v1648_v0, %v1600_v54  ;;  %v2930_v5 = vpop.f32.mrb[21].mxu0  ;;  %v3199_v54 = vmov 0   ;;  %v2729_v0 = vld [vmem:[%s3825_s13] ss:$0 sm:$0xff]  ;;  %s3829_s13 = sld [smem:[#allocation14_spill]] (!%p2759_p5) }
 0x659   : > { %v1651_v6 = vpop.f32.mrb[22].mxu0  ;;  %1989 = vmatprep.mubr.bf16.mxu0 %v3199_v54  ;;  %3041 = vset.pattern.permute.xlu1 %v3199_v54 }
 0x65a   : > { %v2931_v7 = vpop.f32.mrb[23].mxu0  ;;  %3031 = vrot.lane.b32.xlu0 %v3030_v4, %s3197_s19  ;;  %v2730_v6 = vld [vmem:[%s3826_s24] ss:$0 sm:$0xff] }
 0x65f   : > { %v1744_v8 = vpop.f32.mrb[24].mxu0 }
 0x660   : > { %v3035_v9 = vpack.i.bf16 %v1744_v8, %v1696_v45  ;;  %v2942_v10 = vpop.f32.mrb[25].mxu0 }
 0x661   : > { %v1747_v11 = vpop.f32.mrb[26].mxu0 }
 0x662   : > { %v2943_v12 = vpop.f32.mrb[27].mxu0  ;;  %3036 = vrot.lane.b32.xlu1 %v3035_v9, %s3198_s20  ;;  %v1907_v11 = vlaneseq }
 0x664   : > { %v3642_v12 = vshrl.u32 %v1907_v11, 7 }
 0x697   : > { %v3027_v13 = vpop.permute.xlu1 %3026 }
 0x698   : > { %v3029_v15 = vunpack.i.h.bf16 %v3027_v13  ;;  %v3028_v61 = vunpack.i.l.bf16 %v3027_v13  ;;  %v1917_v13 = vsub.s32 2, %v3642_v12 }
 0x69a   : > { %v1775_v21 = vsel %vm871_vm3, %v1456_v32, %v3029_v15  ;;  %v1774_v52 = vsel %vm871_vm3, %v1408_v37, %v3028_v61 }
 0x6cc   : > { %v3032_v14 = vpop.permute.xlu0 %3031 }
 0x6cd   : > { %v3034_v16 = vunpack.i.h.bf16 %v3032_v14  ;;  %v3033_v18 = vunpack.i.l.bf16 %v3032_v14  ;;  %v3646_v14 = vld [vmem:[%s3361_s18] sm:$0x7] }
 0x6ce   : > { %v1918_v15 = vrot.slane %v3646_v14, %v1917_v13  ;;  %v3062_v13 = vld [vmem:[%s3356_s0 + $0x58] sm:$0xff]  }
 0x6cf   : > { %v1778_v19 = vsel %vm1776_vm5, %v1775_v21, %v3034_v16  ;;  %v1777_v22 = vsel %vm1776_vm5, %v1774_v52, %v3033_v18 }
 0x6d4   : > { %v3037_v20 = vpop.permute.xlu1 %3036 }
 0x6d5   : > { %v3039_v44 = vunpack.i.h.bf16 %v3037_v20  ;;  %v3038_v53 = vunpack.i.l.bf16 %v3037_v20 }
 0x6d7   : > { %v1781_v23 = vsel %vm1779_vm6, %v1778_v19, %v3039_v44  ;;  %v1780_v24 = vsel %vm1779_vm6, %v1777_v22, %v3038_v53 }
 0x6d8   : > { %v1782_v25 = vpack.c.bf16 %v1781_v23, %v1780_v24 }
 0x6da   : > { %2949 = vmatmul.mubr.msk.bf16.vlgmr.msra.gmra.mrb[40].mxu1 %vm728_vm1, %v1782_v25 }
 0x6db   : > { %2956 = vmatprep.mubr.msk.bf16.mxu1 %vm3190_vm2, %v3189_v17  ;;  %2953 = vmatpush3.bf16.msra.mxu1 %v3051_v48 }
 0x6dc   : > { %2954 = vmatprep.subr.bf16.mxu1 %v3189_v17 }
 0x6df   : > { %2955 = vmatpush3.bf16.msra.mxu1 %v3055_v51 }
 0x7ad   : > { %v1843_v27 = vpop.f32.mrb[40].mxu1 }
 0x7ae   : > { %v1844_v28 = vadd.f32 %v2725_v26, %v1843_v27  ;;  %v2950_v29 = vpop.f32.mrb[41].mxu1 }
 0x7af   : > { %v1846_v30 = vpop.f32.mrb[42].mxu1 }
 0x7b0   : > { %v3608_v31 = vadd.f32 %v1844_v28, %v3376_v2  ;;  %v1847_v56 = vadd.f32 %v2725_v26, %v1846_v30  ;;  %v2951_v33 = vpop.f32.mrb[43].mxu1 }
 0x7b2   : > { %v3611_v32 = vadd.f32 %v1847_v56, %v3378_v3  ;;  %v1854_v34 = vsel %vm728_vm1, %v3608_v31, 0.0 }
 0x7b3   : > { %1855 = vadd.xlane.f32.xlu0 %v1854_v34 }
 0x7b4   : > { %v1857_v35 = vsel %vm728_vm1, %v3611_v32, 0.0 }
 0x7b5   : > { %1858 = vadd.xlane.f32.xlu1 %v1857_v35 }
 0x840   : > { %v1856_v36 = vpop.xlane.xlu0 %1855 }
 0x841   : > { %v1860_v2 = vmul.f32 0.03125, %v1856_v36 }
 0x842   : > { %v1859_v37 = vpop.xlane.xlu1 %1858 }
 0x843   : > { %v1862_v38 = vsub.f32 %v3608_v31, %v1860_v2  ;;  %v1861_v3 = vmul.f32 0.03125, %v1859_v37 }
 0x845   : > { %v1863_v39 = vsub.f32 %v3611_v32, %v1861_v3  ;;  %v1864_v40 = vmul.f32 %v1862_v38, %v1862_v38 }
 0x847   : > { %v1866_v41 = vsel %vm728_vm1, %v1864_v40, 0.0  ;;  %v1865_v42 = vmul.f32 %v1863_v39, %v1863_v39 }
 0x848   : > { %1867 = vadd.xlane.f32.xlu0 %v1866_v41 }
 0x849   : > { %v1869_v43 = vsel %vm728_vm1, %v1865_v42, 0.0  ;;  %v3669_v42 = vand.u32 127, %v1907_v11  ;;  %v3061_v11 = vld [vmem:[%s3356_s0 + $0x10] sm:$0xff]  }
 0x84c   : > { %1870 = vadd.xlane.f32.xlu0 %v1869_v43 }
 0x8d5   : > { %v1868_v55 = vpop.xlane.xlu0 %1867 }
 0x8d6   : > { %v1872_v57 = vmul.f32 0.03125, %v1868_v55 }
 0x8d8   : > { %v1874_v62 = vadd.f32 1e-05, %v1872_v57 }
 0x8d9   : > { %v1871_v45 = vpop.xlane.xlu0 %1870 }
 0x8da   : > { %3108 = vrsqrt.f32 %v1874_v62  ;;  %v1873_v58 = vmul.f32 0.03125, %v1871_v45 }
 0x8dc   : > { %v1875_v59 = vadd.f32 1e-05, %v1873_v58 }
 0x8de   : > { %3110 = vrsqrt.f32 %v1875_v59 }
 0x8e4   : > { %v3109_v60 = vpop.eup %3108 }
 0x8e5   : > { %v1878_v63 = vmul.f32 %v3109_v60, %v1862_v38 }
 0x8e7   : > { %v1886_v4 = vmul.f32 %v2729_v0, %v1878_v63 }
 0x8e8   : > { %v3111_v1 = vpop.eup %3110 }
 0x8e9   : > { %v1879_v5 = vmul.f32 %v3111_v1, %v1863_v39  ;;  %v1894_v8 = vadd.f32 %v2730_v6, %v1886_v4 }
 0x8eb   : > { %v1887_v7 = vmul.f32 %v2729_v0, %v1879_v5  ;;  %v3200_v5 = vmov 1  }
 0x8ec   : > { %3040 = vset.pattern.permute.xlu0 %v3200_v5 }
 0x8ed   : > { %v1895_v9 = vadd.f32 %v2730_v6, %v1887_v7  ;;  %v3056_v6 = vld [vmem:[%s3356_s0 + $0x40] sm:$0xff]  }
 0x8ee   : > { %v3057_v7 = vld [vmem:[%s3356_s0] sm:$0xff]   ;;  %2815 = vmatprep.subr.bf16.mxu0 %v3056_v6 }
 0x8ef   : > { %v1896_v10 = vpack.c.bf16 %v1895_v9, %v1894_v8  ;;  %v3058_v8 = vld [vmem:[%s3356_s0 + $0x48] sm:$0xff]  }
 0x8f0   : > { %v3059_v9 = vld [vmem:[%s3356_s0 + $0x8] sm:$0xff]  }
 0x8f1   : > { %2737 = vmatmul.mubr.msk.bf16.vlgmr.msra.gmra.mrb[28].mxu0 %vm728_vm1, %v1896_v10  ;;  %2957 = vmatmul.mubr.msk.bf16.vlgmr.msra.gmra.mrb[44].mxu1 %vm728_vm1, %v1896_v10  ;;  %v3060_v10 = vld [vmem:[%s3356_s0 + $0x50] sm:$0xff]  }
 0x8f2   : > { %2816 = vmatpush3.bf16.msra.mxu0 %v3057_v7 }
 0x8f3   : > { %2817 = vmatprep.subr.bf16.mxu0 %v3058_v8 }
 0x8f6   : > { %2818 = vmatpush3.bf16.msra.mxu0 %v3059_v9 }
 0x8f7   : > { %2819 = vmatprep.subr.bf16.mxu0 %v3060_v10 }
 0x8fa   : > { %2820 = vmatpush3.bf16.msra.mxu0 %v3061_v11 }
 0x8fb   : > { %2821 = vmatprep.subr.bf16.mxu0 %v3062_v13 }
 0x9c4   : > { %v3649_v61 = vpop.f32.mrb[28].mxu0  ;;  %v2034_v16 = vpop.f32.mrb[44].mxu1 }
 0x9c5   : > { %v2035_v18 = vadd.f32 %v2034_v16, %v1918_v15  ;;  %v3651_v20 = vpop.f32.mrb[29].mxu0  ;;  %v2958_v21 = vpop.f32.mrb[45].mxu1  ;;  %v3064_v16 = vld [vmem:[%s3356_s0 + $0x60] sm:$0xff]  }
 0x9c6   : > { %v3653_v52 = vpop.f32.mrb[30].mxu0  ;;  %v2037_v44 = vpop.f32.mrb[46].mxu1 }
 0x9c7   : > { %v2038_v53 = vadd.f32 %v2037_v44, %v1918_v15  ;;  %v3655_v19 = vpop.f32.mrb[31].mxu0  ;;  %v2959_v22 = vpop.f32.mrb[47].mxu1  ;;  %v2078_v23 = vsel %vm2077_vm7, %v2035_v18, -inf  ;;  %v3063_v15 = vld [vmem:[%s3356_s0 + $0x18] sm:$0xff]  }
 0x9c8   : > { %2079 = vmax.xlane.f32.xlu0 %v2078_v23  ;;  %2822 = vmatpush3.bf16.msra.mxu0 %v3063_v15 }
 0x9c9   : > { %v2081_v24 = vsel %vm2077_vm7, %v2038_v53, -inf  ;;  %2823 = vmatprep.subr.bf16.mxu0 %v3064_v16 }
 0x9ca   : > { %2082 = vmax.xlane.f32.xlu1 %v2081_v24 }
 0xa55   : > { %v2080_v25 = vpop.xlane.xlu0 %2079 }
 0xa56   : > { %v2084_v26 = vsub.f32 %v2035_v18, %v2080_v25  ;;  %v3065_v18 = vld [vmem:[%s3356_s0 + $0x20] sm:$0xff]  }
 0xa57   : > { %v2083_v27 = vpop.xlane.xlu1 %2082  ;;  %2824 = vmatpush3.bf16.msra.mxu0 %v3065_v18 }
 0xa58   : > { %v2086_v28 = vmul.f32 1.442695, %v2084_v26  ;;  %v2085_v29 = vsub.f32 %v2038_v53, %v2083_v27 }
 0xa5a   : > { %3112 = vpow2.f32 %v2086_v28  ;;  %v2088_v30 = vmul.f32 1.442695, %v2085_v29 }
 0xa5c   : > { %3114 = vpow2.f32 %v2088_v30 }
 0xa64   : > { %v3113_v56 = vpop.eup %3112 }
 0xa65   : > { %v2090_v33 = vsel %vm2077_vm7, %v3113_v56, 0.0 }
 0xa66   : > { %v3115_v34 = vpop.eup %3114  ;;  %2091 = vadd.xlane.f32.xlu0 %v2090_v33  ;;  %v3066_v33 = vld [vmem:[%s3356_s0 + $0x68] sm:$0xff]  }
 0xa67   : > { %v2093_v35 = vsel %vm2077_vm7, %v3115_v34, 0.0  ;;  %2825 = vmatprep.subr.bf16.mxu0 %v3066_v33 }
 0xa68   : > { %2094 = vadd.xlane.f32.xlu1 %v2093_v35 }
 0xaf3   : > { %v2092_v36 = vpop.xlane.xlu0 %2091 }
 0xaf4   : > { %3116 = vrcp.f32 %v2092_v36 }
 0xaf5   : > { %v2095_v2 = vpop.xlane.xlu1 %2094 }
 0xaf6   : > { %3118 = vrcp.f32 %v2095_v2  ;;  %v3068_v2 = vld [vmem:[%s3356_s0 + $0x70] sm:$0xff]  }
 0xafe   : > { %v3117_v37 = vpop.eup %3116 }
 0xaff   : > { %v3661_v38 = vmul.f32 %v3117_v37, %v3113_v56  ;;  %v3069_v37 = vld [vmem:[%s3356_s0 + $0x30] sm:$0xff]  }
 0xb00   : > { %v3119_v3 = vpop.eup %3118 }
 0xb01   : > { %v2102_v39 = vsel %vm2077_vm7, %v3661_v38, -inf  ;;  %v3665_v40 = vmul.f32 %v3119_v3, %v3115_v34  ;;  %v3067_v34 = vld [vmem:[%s3356_s0 + $0x28] sm:$0xff]  }
 0xb02   : > { %2103 = vmax.xlane.f32.xlu0 %v2102_v39  ;;  %2826 = vmatpush3.bf16.msra.mxu0 %v3067_v34 }
 0xb03   : > { %v2105_v41 = vsel %vm2077_vm7, %v3665_v40, -inf  ;;  %v2375_v39 = vsel %vm2077_vm7, %v3665_v40, 0.0  ;;  %2827 = vmatprep.subr.bf16.mxu0 %v3068_v2 }
 0xb04   : > { %2106 = vmax.xlane.f32.xlu1 %v2105_v41  ;;  %v2374_v41 = vsel %vm2077_vm7, %v3661_v38, 0.0 }
 0xb06   : > { %2828 = vmatpush3.bf16.msra.mxu0 %v3069_v37 }
 0xb8f   : > { %v2104_v43 = vpop.xlane.xlu0 %2103 }
 0xb90   : > { %vm2108_vm8 = vcmp.ge.f32.partialorder %v3661_v38, %v2104_v43  ;;  %v2376_v43 = vadd.f32 %v2375_v39, %v2374_v41 }
 0xb91   : > { %v2110_v46 = vsel %vm2108_vm8, %v3669_v42, 2  ;;  %v2107_v47 = vpop.xlane.xlu1 %2106 }
 0xb92   : > { %v2112_v48 = vsel %vm2077_vm7, %v2110_v46, 2147483647  ;;  %vm2109_vm9 = vcmp.ge.f32.partialorder %v3665_v40, %v2107_v47  ;;  %v3071_v46 = vld [vmem:[%s3356_s0 + $0x38] sm:$0xff]  }
 0xb93   : > { %v2111_v49 = vsel %vm2109_vm9, %v3669_v42, 2  ;;  %v2114_v50 = vshra.s32 %v2112_v48, 16  ;;  %v2113_v45 = vand.u32 65535, %v2112_v48  ;;  %v2377_v48 = vrot.slane %v2376_v43, 4 }
 0xb94   : > { %v2127_v51 = vsel %vm2077_vm7, %v2111_v49, 2147483647 }
 0xb95   : > { %v2116_v55 = vcvt.s32.f32 %v2114_v50  ;;  %v2129_v57 = vshra.s32 %v2127_v51, 16  ;;  %v2128_v58 = vand.u32 65535, %v2127_v51  ;;  %v2115_v60 = vcvt.s32.f32 %v2113_v45 }
 0xb96   : > { %v2378_v50 = vadd.f32 %v2377_v48, %v2376_v43 }
 0xb97   : > { %2117 = vmin.xlane.f32.xlu0 %v2116_v55  ;;  %v2131_v62 = vcvt.s32.f32 %v2129_v57  ;;  %v2130_v1 = vcvt.s32.f32 %v2128_v58 }
 0xb99   : > { %2132 = vmin.xlane.f32.xlu1 %v2131_v62 }
 0xc24   : > { %v2118_v59 = vpop.xlane.xlu0 %2117 }
 0xc25   : > { %vm2119_vm10 = vcmp.eq.f32.partialorder %v2116_v55, %v2118_v59  ;;  %v2124_v21 = vcvt.f32.s32 %v2118_v59 }
 0xc26   : > { %v2133_v63 = vpop.xlane.xlu1 %2132  ;;  %v2120_v0 = vsel %vm2119_vm10, %v2115_v60, inf }
 0xc27   : > { %2121 = vmin.xlane.f32.xlu0 %v2120_v0  ;;  %vm2134_vm11 = vcmp.eq.f32.partialorder %v2131_v62, %v2133_v63  ;;  %v2139_v44 = vcvt.f32.s32 %v2133_v63  ;;  %v2125_v22 = vshll.u32 %v2124_v21, 16  ;;  %v1913_v0 = vsub.s32 1, %v3642_v12 }
 0xc28   : > { %v2135_v4 = vsel %vm2134_vm11, %v2130_v1, inf }
 0xc29   : > { %2136 = vmin.xlane.f32.xlu1 %v2135_v4  ;;  %v2140_v25 = vshll.u32 %v2139_v44, 16  ;;  %v1914_v1 = vrot.slane %v3646_v14, %v1913_v0  ;;  %v1909_v4 = vsub.s32 0, %v3642_v12 }
 0xc2b   : > { %v1910_v6 = vrot.slane %v3646_v14, %v1909_v4  ;;  %v1998_v7 = vadd.f32 %v3655_v19, %v1914_v1 }
 0xc2d   : > { %v1992_v9 = vadd.f32 %v3649_v61, %v1910_v6  ;;  %v2044_v10 = vmul.f32 %v1998_v7, %v1998_v7  ;;  %v1996_v11 = vadd.f32 %v3653_v52, %v1910_v6 }
 0xc2f   : > { %v2041_v15 = vmul.f32 %v1992_v9, %v1992_v9  ;;  %v2048_v16 = vmul.f32 %v2044_v10, %v1998_v7  ;;  %v2043_v18 = vmul.f32 %v1996_v11, %v1996_v11 }
 0xc31   : > { %v2045_v44 = vmul.f32 %v2041_v15, %v1992_v9  ;;  %v2047_v12 = vmul.f32 %v2043_v18, %v1996_v11 }
 0xc33   : > { %v2051_v14 = vmul.f32 0.044715, %v2047_v12 }
 0xcb4   : > { %v2122_v53 = vpop.xlane.xlu0 %2121 }
 0xcb5   : > { %v2123_v23 = vcvt.f32.s32 %v2122_v53  ;;  %v2052_v53 = vmul.f32 0.044715, %v2048_v16 }
 0xcb6   : > { %v2137_v24 = vpop.xlane.xlu1 %2136 }
 0xcb7   : > { %v2126_v26 = vadd.s32 %v2125_v22, %v2123_v23  ;;  %v2138_v27 = vcvt.f32.s32 %v2137_v24  ;;  %v2056_v23 = vadd.f32 %v2052_v53, %v1998_v7 }
 0xcb9   : > { %vm2142_vm12 = vcmp.eq.s32.totalorder %v3669_v42, %v2126_v26  ;;  %v2141_v28 = vadd.s32 %v2140_v25, %v2138_v27  ;;  %v2060_v25 = vmul.f32 0.7978846, %v2056_v23  ;;  %v2055_v26 = vadd.f32 %v2051_v14, %v1996_v11  ;;  %v3128_v14 = vld [vmem:[%s3827_s28] sm:$0xff] (!%p2759_p5)  }
 0xcba   : > { %v2739_v29 = vsel %vm2142_vm12, 1.0, %v3189_v17 }
 0xcbb   : > { %vm2143_vm13 = vcmp.eq.s32.totalorder %v3669_v42, %v2141_v28  ;;  %v2148_v30 = vmul.f32 %v2739_v29, %v3661_v38  ;;  %v2363_v3 = vsel %vm2077_vm7, %v2739_v29, 0.0  ;;  %v3070_v42 = vld [vmem:[%s3356_s0 + $0x78] sm:$0xff]   ;;  %v2059_v52 = vmul.f32 0.7978846, %v2055_v26 }
 0xcbc   : > { %v2740_v56 = vsel %vm2143_vm13, 1.0, %v3189_v17  ;;  %2829 = vmatprep.subr.bf16.mxu0 %v3070_v42 }
 0xcbd   : > { %2164 = vperm.xlu0 %3040, %v2148_v30   ;;  %2152 = vperm.xlu1 %3041, %v2148_v30   ;;  %v2149_v35 = vmul.f32 %v2740_v56, %v3665_v40  ;;  %v2364_v36 = vsel %vm2077_vm7, %v2740_v56, 0.0  ;;  %v2379_v40 = vrot.slane %v2378_v50, 2 }
 0xcbe   : > { %v2365_v17 = vadd.f32 %v2364_v36, %v2363_v3  ;;  %2830 = vmatpush3.bf16.msra.mxu0 %v3071_v46 }
 0xcbf   : > { %v2380_v57 = vadd.f32 %v2379_v40, %v2378_v50 }
 0xcc0   : > { %v2366_v47 = vrot.slane %v2365_v17, 4 }
 0xcc1   : > { %3042 = vset.pattern.permute.xlu1 %v3200_v5  ;;  %v1994_v5 = vadd.f32 %v3651_v20, %v1914_v1  ;;  %v2049_v20 = vmul.f32 0.044715, %v2045_v44 }
 0xcc2   : > { %2168 = vperm.xlu1 %3042, %v2149_v35   ;;  %v2367_v49 = vadd.f32 %v2366_v47, %v2365_v17 }
 0xcc3   : > { %v2042_v8 = vmul.f32 %v1994_v5, %v1994_v5  ;;  %v2053_v19 = vadd.f32 %v2049_v20, %v1992_v9 }
 0xcc4   : > { %v2368_v51 = vrot.slane %v2367_v49, 2 }
 0xcc5   : > { %v2046_v13 = vmul.f32 %v2042_v8, %v1994_v5  ;;  %v2057_v61 = vmul.f32 0.7978846, %v2053_v19  ;;  %v3129_v19 = vld [vmem:[%s3827_s28 + $0x8] sm:$0xff] (!%p2759_p5)  }
 0xcc6   : > { %3043 = vset.pattern.permute.xlu1 %v3199_v54  ;;  %v2369_v55 = vadd.f32 %v2368_v51, %v2367_v49  ;;  %v2381_v54 = vrot.slane %v2380_v57, 1 }
 0xcc7   : > { %2157 = vperm.xlu1 %3043, %v2149_v35   ;;  %v2050_v21 = vmul.f32 0.044715, %v2046_v13 }
 0xcc8   : > { %v2370_v62 = vrot.slane %v2369_v55, 1  ;;  %v2382_v58 = vadd.f32 %v2381_v54, %v2380_v57  ;;  %v2741_v54 = vld [vmem:[%s3367_s14] ss:$0 sm:$0xff] }
 0xcc9   : > { %v2054_v22 = vadd.f32 %v2050_v21, %v1994_v5 }
 0xcca   : > { %v2371_v45 = vadd.f32 %v2370_v62, %v2369_v55  ;;  %v2383_v60 = vmul.f32 0.0625, %v2382_v58  ;;  %v2758_v58 = vld [vmem:[%s3367_s14 + $0x1] ss:$0 sm:$0xff] }
 0xccb   : > { %v2058_v24 = vmul.f32 0.7978846, %v2054_v22 }
 0xccc   : > { %v2373_v59 = vmul.f32 0.0625, %v2371_v45 }
 0xccd   : > { %3120 = vtanh.f32 %v2058_v24  ;;  %v3201_v24 = vmov (!%p2759_p5), 0.0  }
 0xcce   : > { %v2385_v38 = vmul.f32 %v2383_v60, %v2373_v59  ;;  %3122 = vtanh.f32 %v2060_v25  ;;  %2960 = vmatprep.subr.bf16.mxu0 (!%p2759_p5), %v3201_v24 }
 0xccf   : > { %3124 = vtanh.f32 %v2057_v61 }
 0xcd0   : > { %v2386_v63 = vsel %vm2077_vm7, %v2385_v38, 0.0  ;;  %3126 = vtanh.f32 %v2059_v52 }
 0xcd7   : > { %v3121_v27 = vpop.eup %3120 }
 0xcd8   : > { %v3123_v28 = vpop.eup %3122  ;;  %v2066_v29 = vadd.f32 1.0, %v3121_v27 }
 0xcd9   : > { %v2068_v30 = vadd.f32 1.0, %v3123_v28  ;;  %v3125_v56 = vpop.eup %3124 }
 0xcda   : > { %v3127_v33 = vpop.eup %3126  ;;  %v2070_v34 = vmul.f32 0.5, %v2066_v29  ;;  %v2065_v2 = vadd.f32 1.0, %v3125_v56  ;;  %v2760_v56 = vld [vmem:[%s3828_s21] ss:$0 sm:$0xff] (!%p2759_p5) }
 0xcdb   : > { %v2072_v36 = vmul.f32 0.5, %v2068_v30  ;;  %v2067_v37 = vadd.f32 1.0, %v3127_v33 }
 0xcdc   : > { %v2074_v39 = vmul.f32 %v2070_v34, %v1994_v5  ;;  %v2069_v41 = vmul.f32 0.5, %v2065_v2 }
 0xcdd   : > { %v2076_v17 = vmul.f32 %v2072_v36, %v1998_v7  ;;  %v2071_v43 = vmul.f32 0.5, %v2067_v37  ;;  %v2761_v36 = vld [vmem:[%s3829_s13] ss:$0 sm:$0xff] (!%p2759_p5) }
 0xcde   : > { %v2073_v49 = vmul.f32 %v2069_v41, %v1992_v9 }
 0xcdf   : > { %v2075_v50 = vmul.f32 %v2071_v43, %v1996_v11 }
 0xceb   : > { %2387 = vadd.xlane.f32.xlu1 %v2386_v63 }
 0xd3c   : > { %v2153_v35 = vpop.permute.xlu1 %2152  ;;  %v2165_v3 = vpop.permute.xlu0 %2164 }
 0xd3d   : > { %v2171_v46 = vmul.f32 %v2165_v3, %v2074_v39  ;;  %v2160_v40 = vmul.f32 %v2153_v35, %v2073_v49  ;;  %v2211_v60 = vmul.f32 %v2741_v54, %v2153_v35  ;;  %v2355_v1 = vmul.f32 %v2758_v58, %v2165_v3 }
 0xd41   : > { %v2169_v42 = vpop.permute.xlu1 %2168 }
 0xd42   : > { %v2172_v47 = vmul.f32 %v2169_v42, %v2076_v17  ;;  %v2356_v7 = vmul.f32 %v2758_v58, %v2169_v42 }
 0xd44   : > { %v2173_v48 = vpack.c.bf16 %v2172_v47, %v2171_v46 }
 0xd46   : > { %2341 = vmatprep.mubr.bf16.mxu0 %v2173_v48  ;;  %v2158_v51 = vpop.permute.xlu1 %2157 }
 0xd47   : > { %v2161_v55 = vmul.f32 %v2158_v51, %v2075_v50  ;;  %v2212_v4 = vmul.f32 %v2741_v54, %v2158_v51 }
 0xd49   : > { %v2162_v57 = vpack.c.bf16 %v2161_v55, %v2160_v40 }
 0xd4b   : > { %2342 = vmatmul.mubr.bf16.vlgmr.msra.gmra.mrb[32].mxu0 %v2162_v57 }
 0xd4c   : > { %2964 = vmatprep.mubr.msk.bf16.mxu0 (!%p2759_p5), %vm3202_vm14, %v3201_v24  ;;  %2961 = vmatpush3.bf16.msra.mxu0 (!%p2759_p5), %v3128_v14 }
 0xd4d   : > { %2962 = vmatprep.subr.bf16.mxu0 (!%p2759_p5), %v3201_v24 }
 0xd50   : > { %2963 = vmatpush3.bf16.msra.mxu0 (!%p2759_p5), %v3129_v19 }
 0xd78   : > { %v2388_v62 = vpop.xlane.xlu1 %2387 }
 0xd79   : > { %2970 = vpush %v2388_v62 }
 0xdaa   : > { %s2971_s0 = spop %2970 }
 0xdab   : > { %s2390_s18 = smul.f32 2.0, %s2971_s0 }
 0xdad   : > { %s2391_s27 = sadd.f32 %s2390_s18, %s2384_s26 }
 0xdaf   : > { %2393 = sst [smem:[#allocation6]] %s2391_s27 }
 0xe1e   : > { %v2831_v45 = vpop.f32.mrb[32].mxu0 }
 0xe1f   : > { %v2832_v59 = vpop.f32.mrb[33].mxu0 }
 0xe20   : > { %v2833_v38 = vadd.f32 %v2832_v59, %v2831_v45  ;;  %v2834_v63 = vpop.f32.mrb[34].mxu0 }
 0xe21   : > { %v2835_v0 = vpop.f32.mrb[35].mxu0 }
 0xe22   : > { %v2344_v5 = vadd.f32 %v2833_v38, %v2211_v60  ;;  %v2836_v6 = vadd.f32 %v2835_v0, %v2834_v63 }
 0xe24   : > { %v2357_v8 = vadd.f32 %v2355_v1, %v2344_v5  ;;  %v2347_v9 = vadd.f32 %v2836_v6, %v2212_v4  ;;  %2397 = sbr.rel (%p2759_p5) target bundleno = 4158 (0x103e), region = 92 }
 0xe26   : > { %v2359_v10 = vadd.f32 %v2357_v8, %v3608_v31  ;;  %v2358_v11 = vadd.f32 %v2356_v7, %v2347_v9 }
 0xe28   : > { %2361 = vst.msk [vmem:[#allocation2] sm:$0xff] %vm728_vm1, %v2359_v10  ;;  %v2360_v13 = vadd.f32 %v2358_v11, %v3611_v32  ;;  %v2400_v15 = vsel (!%p2759_p5), %vm728_vm1, %v2359_v10, 0.0 }
 0xe29   : > { %2401 = vadd.xlane.f32.xlu0 (!%p2759_p5), %v2400_v15 }
 0xe2a   : > { %2362 = vst.msk [vmem:[#allocation2 + $0x8] sm:$0xff] %vm728_vm1, %v2360_v13  ;;  %v2403_v16 = vsel (!%p2759_p5), %vm728_vm1, %v2360_v13, 0.0 }
 0xe2d   : > { %2404 = vadd.xlane.f32.xlu0 %v2403_v16 }
 0xeb6   : > { %v2402_v18 = vpop.xlane.xlu0 %2401 }
 0xeb7   : > { %v2406_v21 = vmul.f32 0.03125, %v2402_v18 }
 0xeb9   : > { %v2408_v44 = vsub.f32 %v2359_v10, %v2406_v21 }
 0xeba   : > { %v2405_v31 = vpop.xlane.xlu0 %2404 }
 0xebb   : > { %v2407_v53 = vmul.f32 0.03125, %v2405_v31  ;;  %v2410_v12 = vmul.f32 %v2408_v44, %v2408_v44 }
 0xebd   : > { %v2409_v22 = vsub.f32 %v2360_v13, %v2407_v53  ;;  %v2412_v32 = vsel %vm728_vm1, %v2410_v12, 0.0 }
 0xebe   : > { %2413 = vadd.xlane.f32.xlu1 %v2412_v32 }
 0xebf   : > { %v2411_v20 = vmul.f32 %v2409_v22, %v2409_v22 }
 0xec1   : > { %v2415_v23 = vsel %vm728_vm1, %v2411_v20, 0.0 }
 0xec2   : > { %2416 = vadd.xlane.f32.xlu1 %v2415_v23 }
 0xf4b   : > { %v2414_v25 = vpop.xlane.xlu1 %2413 }
 0xf4c   : > { %v2418_v26 = vmul.f32 0.03125, %v2414_v25 }
 0xf4e   : > { %v2420_v61 = vadd.f32 1e-05, %v2418_v26 }
 0xf4f   : > { %v2417_v52 = vpop.xlane.xlu1 %2416 }
 0xf50   : > { %3130 = vrsqrt.f32 %v2420_v61  ;;  %v2419_v27 = vmul.f32 0.03125, %v2417_v52 }
 0xf52   : > { %v2421_v28 = vadd.f32 1e-05, %v2419_v27 }
 0xf54   : > { %3132 = vrsqrt.f32 %v2421_v28 }
 0xf5a   : > { %v3131_v29 = vpop.eup %3130 }
 0xf5b   : > { %v2424_v30 = vmul.f32 %v3131_v29, %v2408_v44 }
 0xf5d   : > { %v2432_v35 = vmul.f32 %v2760_v56, %v2424_v30 }
 0xf5e   : > { %v3133_v33 = vpop.eup %3132 }
 0xf5f   : > { %v2425_v34 = vmul.f32 %v3133_v33, %v2409_v22  ;;  %v2440_v37 = vadd.f32 %v2761_v36, %v2432_v35 }
 0xf61   : > { %v2433_v2 = vmul.f32 %v2760_v56, %v2425_v34 }
 0xf63   : > { %v2441_v3 = vadd.f32 %v2761_v36, %v2433_v2 }
 0xf65   : > { %v2442_v39 = vpack.c.bf16 %v2441_v3, %v2440_v37 }
 0xf67   : > { %2965 = vmatmul.mubr.msk.bf16.vlgmr.msra.gmra.mrb[0].mxu0 %vm728_vm1, %v2442_v39 }
0x103a   : > { %v2496_v17 = vpop.f32.mrb[0].mxu0 }
0x103b   : > { %2503 = vst [vmem:[#allocation3] sm:$0xff] %v2496_v17  ;;  %v2966_v41 = vpop.f32.mrb[1].mxu0 }
0x103c   : > { %v2499_v42 = vpop.f32.mrb[2].mxu0 }
0x103d   : > { %2504 = vst [vmem:[#allocation3 + $0x8] sm:$0xff] %v2499_v42  ;;  %v2967_v43 = vpop.f32.mrb[3].mxu0 }
0x103e PF: > { %p2980_p6 = scmp.eq.s32.totalorder %s3302_s25, 1  ;;  %s3203_s15 = smov [#allocation3]  }
0x103f   : > { %s2511_s3 = sshll.u32 %s3203_s15, 4  ;;  %s2512_s3 = int_to_ptr.vmem [resolvable:$true] %s2511_s3 }
0x1040   : > { %s3134_s24 = scalar_lea.vmem %s2512_s3, 256  ;;  %p3141_p10 = scmp.lt.s32.totalorder %s2512_s3, %s2512_s3 }
0x1041   : > { %p3135_p7 = scmp.ne.s32.totalorder %s2512_s3, %s3134_s24  ;;  %p3142_p11 = scmp.lt.s32.totalorder %s3134_s24, %s3134_s24 }
0x1043   : > { %p3136_p8 = pnand %p3135_p7, %p2980_p6  ;;  %p3143_p12 = por %p3142_p11, %p3141_p10 }
0x1045   : > { %p3137_p9 = pneg %p3136_p8 }
0x1047   : > { %p3144_p13 = pnand %p3143_p12, %p3137_p9 }
0x1049   : > { %3147 = shalt.err (!%p3144_p13)
}
0x104a   : > { %s3830_s18 = sld [smem:[#allocation16_spill]] }
0x1050   : > { %s3148_s27 = scalar_lea.hbm %s3830_s18, 256 }
0x1051   : > { %p3149_p0 = scmp.ne.s32.totalorder %s3830_s18, %s3148_s27  ;;  %p3154_p3 = scmp.lt.u32.totalorder %s3148_s27, %s3830_s18 }
0x1053   : > { %p3150_p1 = pnand %p3149_p0, %p2980_p6 }
0x1055   : > { %p3151_p2 = pneg %p3150_p1 }
0x1057   : > { %p3156_p4 = pnand %p3154_p3, %p3151_p2 }
0x1059   : > { %3159 = shalt.err (!%p3156_p4)
}
0x105a   : > { %s3204_s20 = smov 128   ;;  %s3831_s13 = sld [smem:[#allocation17_spill]] }
0x105b   : > { %2973 = dma.vmem_to_hbm [thread:$0]  (%p2980_p6), %s2512_s3, 256, %s3830_s18, [#allocation4], %s3204_s20, %s3204_s20, %s3196_s29  }
0x1060   : > { %s3160_s15 = scalar_lea.hbm %s3831_s13, 16 }
0x1061   : > { %p3161_p5 = scmp.ne.s32.totalorder %s3831_s13, %s3160_s15  ;;  %p3166_p9 = scmp.lt.u32.totalorder %s3160_s15, %s3831_s13 }
0x1063   : > { %p3162_p7 = pnand %p3161_p5, %p2980_p6 }
0x1065   : > { %p3163_p8 = pneg %p3162_p7 }
0x1067   : > { %p3168_p10 = pnand %p3166_p9, %p3163_p8 }
0x1069   : > { %3171 = shalt.err (!%p3168_p10)
}
0x106a   : > { %s3205_s14 = smov [#allocation6]  }
0x106b   : > { %2975 = dma.smem_to_hbm (%p2980_p6), %s3205_s14, 16, %s3831_s13, [#allocation5]  }
0x106c   : > { %3177 = dma.done.wait (%p2980_p6), [#allocation4], 256  }
0x106d   : > { %3179 = vsyncadd (%p2980_p6), [#allocation4], 4294967040 }
0x106e   : > { %3181 = dma.done.wait (%p2980_p6), [#allocation5], 16  }
0x106f   : > { %3183 = vsyncadd (%p2980_p6), [#allocation5], 4294967280 }
0x1070   : > { %2535 = sfence }
0x1071 PF: > { %s3832_s22 = sld [smem:[#allocation9_spill]] }
0x1077   : > { %s30_s24 = sadd.s32 1, %s3832_s22  }
0x1078   : > { %p27_p11 = scmp.ge.s32.totalorder %s30_s24, 4  }
0x107a   :  { %29 = sbr.rel (!%p27_p11) target bundleno = 11 (0xb), region = 163 }
0x1081   :  { %2541 = vsyncpa [#allocation4], 1 }
0x1082   :  { %2543 = vsyncpa [#allocation4 + $0x1], 1 }
0x1083   :  { %2544 = vsyncpa [#allocation5], 1 }
0x1084   :  { %2546 = vsyncpa [#allocation5 + $0x1], 1 }

</bundles_post_ra>
